<compile_context>
chip_gen: v7x
topology: tpu7x:2x2x1
jax: 0.10.0
libtpu: 0.0.40
codegen_flags: <defaults>
</compile_context>

<pallas_src>
import math

import numpy as np
import jax
import jax.numpy as jnp
from jax.experimental import pallas as pl
from jax.experimental.pallas import tpu as pltpu

# ---- module hyper-parameters (small test sizes) ----
D_MODEL = 32
D_HEAD = 8
N_HEADS = D_MODEL // D_HEAD
D_FF = 64
COND_FEATURES = 16
H = 8
W = 8
HW = H * W
BATCH = 2
D4 = D_HEAD // 4          # rotary half-dim (theta width)
EPS_NORM = 1e-6
EPS_COS = 1e-6


def _layer_kernel(x_ref, ada_ref, cs_ref, hp_ref,
                  wqkv_ref, wout_ref, wup_ref, wdown_ref, o_ref):
    f32 = jnp.float32
    bf16 = jnp.bfloat16
    dm = D_MODEL

    x = x_ref[...]                                     # (HW, dm) f32, one sample
    b = pl.program_id(0)
    ada = ada_ref[pl.ds(b, 1), :]                      # (1, 2*dm): [attn | ff]
    ada_a = ada[:, :dm]
    ada_f = ada[:, dm:]

    cs = cs_ref[...]                                   # (HW, 4*dm): [cos_q|cos_k|sin_q|sin_k]
    cos_qk = cs[:, :2 * dm]
    sin_qk = cs[:, 2 * dm:]
    hp = hp_ref[...]                                   # (2*dm, 4*dm): [hsum | psign]
    hsum = hp[:, :2 * dm]
    psign = hp[:, 2 * dm:]

    # ---------------- self-attention block ----------------
    # AdaRMSNorm (conditioning row broadcast across this sample's rows).
    mean_sq = jnp.mean(x * x, axis=-1, keepdims=True)
    xn = x * (ada_a * jax.lax.rsqrt(mean_sq + EPS_NORM))

    # Fused qkv projection: one bf16 MXU matmul, f32 accumulation.
    qkv = jnp.dot(xn.astype(bf16), wqkv_ref[...],
                  preferred_element_type=f32)          # (HW, 3*dm)
    qk = qkv[:, :2 * dm]                               # fused q|k slab (64 lanes)
    v = qkv[:, 2 * dm:]                                # (HW, dm)

    # Cosine-sim normalization on the fused q|k slab: per-head sum of squares
    # via one block-diagonal ones matmul.  sqrt(scale) is folded into the
    # cos/sin tables, so only rsqrt(sum_sq + eps) is applied here.
    sumsq = jnp.dot(qk * qk, hsum, preferred_element_type=f32)
    qk = qk * jax.lax.rsqrt(sumsq + EPS_COS)

    # Axial RoPE on the fused slab: rotate-half via a signed block-permutation
    # matmul plus two VPU multiplies (tables carry sqrt(scale)).
    qk = qk * cos_qk + jnp.dot(qk, psign, preferred_element_type=f32) * sin_qk
    q = qk[:, :dm]
    k = qk[:, dm:]

    # Attention per head (static loop; this grid step holds one sample).
    o_parts = []
    for h in range(N_HEADS):
        lo, hi = h * D_HEAD, (h + 1) * D_HEAD
        qh = q[:, lo:hi].astype(bf16)                  # (HW, D_HEAD)
        kh = k[:, lo:hi].astype(bf16)
        vh = v[:, lo:hi].astype(bf16)
        s = jax.lax.dot_general(qh, kh, (((1,), (1,)), ((), ())),
                                preferred_element_type=f32)    # (HW, HW)
        m = jnp.max(s, axis=-1, keepdims=True)         # scale is learned -> keep max
        p = jnp.exp(s - m)
        l = jnp.sum(p, axis=-1, keepdims=True)
        oh = jnp.dot(p.astype(bf16), vh, preferred_element_type=f32)
        o_parts.append(oh * pl.reciprocal(l, approx=True))
    # Lane-assemble the head outputs and fold through w_out with one K=32
    # matmul (instead of four K=8 folds).
    o = jnp.concatenate(o_parts, axis=-1)              # (HW, dm)
    attn = x + jnp.dot(o.astype(bf16), wout_ref[...], preferred_element_type=f32)
    # dropout is identity (p = 0 / eval)

    # ---------------- feed-forward block ----------------
    mean_sq2 = jnp.mean(attn * attn, axis=-1, keepdims=True)
    xn2 = attn * (ada_f * jax.lax.rsqrt(mean_sq2 + EPS_NORM))
    up_full = jnp.dot(xn2.astype(bf16), wup_ref[...],
                      preferred_element_type=f32)      # (HW, 2*D_FF) lane-dense
    up = up_full[:, :D_FF]
    gate = up_full[:, D_FF:]
    # TODO(synk): torch F.gelu defaults to the exact erf GELU; the tanh
    # approximation is used here (and in the reference) to stay on EUP ops.
    hidden = up * jax.nn.gelu(gate, approximate=True)
    out = attn + jnp.dot(hidden.astype(bf16), wdown_ref[...],
                         preferred_element_type=f32)

    o_ref[...] = out.astype(o_ref.dtype)


def global_transformer_layer(x, pos, cond, params):
    n, hh, ww, dm = x.shape
    hw = hh * ww
    assert (n, hw, dm) == (BATCH, HW, D_MODEL)
    f32 = jnp.float32
    bf16 = jnp.bfloat16

    x2 = x.reshape(n * hw, dm).astype(f32)

    # AdaRMSNorm conditioning for both blocks in one fused matmul: (n, 2*dm).
    w_norm = jnp.concatenate([params['w_norm_attn'], params['w_norm_ff']],
                             axis=1).astype(f32)
    ada = cond.astype(f32) @ w_norm + 1.0                          # (n, 2*dm)

    # Axial-RoPE cos/sin tables with sqrt(scale) folded in.  Per-row layout:
    # [cos_q (dm) | cos_k (dm) | sin_q (dm) | sin_k (dm)] -> one lane-dense
    # (n*hw, 128) slab.  Non-rotated head lanes get cos = sqrt(scale), sin = 0,
    # so the table also applies the cosine-sim scale (rsqrt-only norm in-kernel).
    posf = pos.reshape(n, hw, 2).astype(f32)
    freqs = params['freqs'].astype(f32)                            # (N_HEADS, D4/2)
    th = posf[:, :, None, 0:1] * freqs[None, None]                 # (n, hw, NH, .)
    tw = posf[:, :, None, 1:2] * freqs[None, None]
    theta = jnp.concatenate([th, tw], axis=-1)                     # (n, hw, NH, D4)
    theta2 = jnp.concatenate([theta, theta], axis=-1)              # (n, hw, NH, 2*D4)
    tail = jnp.ones((n, hw, N_HEADS, D_HEAD - 2 * D4), f32)
    cos_h = jnp.concatenate([jnp.cos(theta2), tail], axis=-1)
    sin_h = jnp.concatenate([jnp.sin(theta2), jnp.zeros_like(tail)], axis=-1)
    sqrt_scale = jnp.sqrt(params['scale'].astype(f32))[None, None, :, None]
    cos_q = (cos_h * sqrt_scale).reshape(n * hw, dm)
    sin_q = (sin_h * sqrt_scale).reshape(n * hw, dm)
    cos_sin = jnp.concatenate([cos_q, cos_q, sin_q, sin_q], axis=-1)   # (n*hw, 4*dm)

    # Static helper constants merged into one lane-dense slab:
    #   hsum  (2*dm, 2*dm): block-diagonal per-head ones  -> per-head sum-of-squares
    #   psign (2*dm, 2*dm): signed rotate-half block permutation for RoPE
    head_ones = np.kron(np.eye(2 * N_HEADS), np.ones((D_HEAD, D_HEAD)))
    pbl = np.zeros((D_HEAD, D_HEAD), np.float64)
    pbl[np.arange(D4), np.arange(D4) + D4] = 1.0
    pbl[np.arange(D4) + D4, np.arange(D4)] = -1.0
    p_signed = np.kron(np.eye(2 * N_HEADS), pbl)
    hp = jnp.asarray(np.concatenate([head_ones, p_signed], axis=1), dtype=f32)

    # Weights stay unsplit; bf16 MXU operands (f32 accumulation in-kernel).
    w_qkv = params['w_qkv'].astype(bf16)
    w_out = params['w_out'].astype(bf16)
    w_up = params['w_up'].astype(bf16)
    w_down = params['w_down'].astype(bf16)

    out = pl.pallas_call(
        _layer_kernel,
        out_shape=jax.ShapeDtypeStruct((n * hw, dm), f32),
        grid_spec=pltpu.PrefetchScalarGridSpec(
            num_scalar_prefetch=0,
            grid=(n,),                                  # one 64-row sample per step
            in_specs=[
                pl.BlockSpec((hw, dm), lambda b: (b, 0)),            # x rows
                pl.BlockSpec((n, 2 * dm), lambda b: (0, 0)),         # ada table
                pl.BlockSpec((hw, 4 * dm), lambda b: (b, 0)),        # cos|sin slab
                pl.BlockSpec((2 * dm, 4 * dm), lambda b: (0, 0)),    # hsum|psign
                pl.BlockSpec((dm, 3 * dm), lambda b: (0, 0)),        # w_qkv
                pl.BlockSpec((dm, dm), lambda b: (0, 0)),            # w_out
                pl.BlockSpec((dm, 2 * D_FF), lambda b: (0, 0)),      # w_up
                pl.BlockSpec((D_FF, dm), lambda b: (0, 0)),          # w_down
            ],
            out_specs=pl.BlockSpec((hw, dm), lambda b: (b, 0)),
        ),
        compiler_params=pltpu.CompilerParams(
            dimension_semantics=("parallel",)),
    )(x2, ada, cos_sin, hp, w_qkv, w_out, w_up, w_down)

    return out.reshape(n, hh, ww, dm).astype(x.dtype)


def make_freqs():
    # Exactly mirrors AxialRoPE.__init__ with dim = d_head // 2.
    dim = D_HEAD // 2
    log_min = math.log(math.pi)
    log_max = math.log(10.0 * math.pi)
    freqs = jnp.exp(jnp.linspace(log_min, log_max, N_HEADS * dim // 4 + 1)[:-1])
    return freqs.reshape(dim // 4, N_HEADS).T.astype(jnp.float32)     # (N_HEADS, 1)


def reference(x, pos, cond, params):
    """Pure-JAX mirror of GlobalTransformerLayer.forward (non-flash branch)."""
    n, h, w, dm = x.shape
    hw = h * w

    # --- SelfAttentionBlock ---
    skip = x
    ada = cond @ params['w_norm_attn'] + 1.0
    mean_sq = jnp.mean(x ** 2, axis=-1, keepdims=True)
    xn = x * (ada[:, None, None, :] * jax.lax.rsqrt(mean_sq + EPS_NORM))
    qkv = xn @ params['w_qkv']
    qkv = qkv.reshape(n, hw, 3, N_HEADS, D_HEAD)
    q = jnp.transpose(qkv[:, :, 0], (0, 2, 1, 3))
    k = jnp.transpose(qkv[:, :, 1], (0, 2, 1, 3))
    v = jnp.transpose(qkv[:, :, 2], (0, 2, 1, 3))
    sqrt_sc = jnp.sqrt(params['scale'])[None, :, None, None]
    q = q * (sqrt_sc * jax.lax.rsqrt(jnp.sum(q ** 2, -1, keepdims=True) + EPS_COS))
    k = k * (sqrt_sc * jax.lax.rsqrt(jnp.sum(k ** 2, -1, keepdims=True) + EPS_COS))
    posf = pos.reshape(n, hw, 2)
    freqs = params['freqs']
    theta = jnp.concatenate([posf[:, :, None, 0:1] * freqs[None, None],
                             posf[:, :, None, 1:2] * freqs[None, None]], axis=-1)
    theta = jnp.transpose(theta, (0, 2, 1, 3))                        # (n, nh, hw, D4)
    cos, sin = jnp.cos(theta), jnp.sin(theta)

    def rope(t):
        t1, t2, rest = t[..., :D4], t[..., D4:2 * D4], t[..., 2 * D4:]
        return jnp.concatenate(
            [t1 * cos - t2 * sin, t2 * cos + t1 * sin, rest], axis=-1)

    q, k = rope(q), rope(k)
    s = jnp.einsum('bnqe,bnke->bnqk', q, k)
    p = jax.nn.softmax(s, axis=-1)
    o = jnp.einsum('bnqk,bnke->bnqe', p, v)
    o = jnp.transpose(o, (0, 2, 1, 3)).reshape(n, h, w, dm)
    x1 = o @ params['w_out'] + skip

    # --- FeedForwardBlock ---
    skip2 = x1
    ada2 = cond @ params['w_norm_ff'] + 1.0
    mean_sq2 = jnp.mean(x1 ** 2, axis=-1, keepdims=True)
    xn2 = x1 * (ada2[:, None, None, :] * jax.lax.rsqrt(mean_sq2 + EPS_NORM))
    up = xn2 @ params['w_up']
    a, g = up[..., :D_FF], up[..., D_FF:]
    hidden = a * jax.nn.gelu(g, approximate=True)
    return hidden @ params['w_down'] + skip2


if __name__ == "__main__":
    key = jax.random.PRNGKey(0)
    kx, kc, k1, k2, k3, k4, k5, k6 = jax.random.split(key, 8)
    x = jax.random.normal(kx, (BATCH, H, W, D_MODEL), jnp.float32)
    cond = jax.random.normal(kc, (BATCH, COND_FEATURES), jnp.float32)

    # Axial positions in [-1, 1] for each (h, w) location, last dim = (y, x).
    ys = jnp.linspace(-1.0, 1.0, H)
    xs = jnp.linspace(-1.0, 1.0, W)
    gy, gx = jnp.meshgrid(ys, xs, indexing='ij')
    pos = jnp.broadcast_to(jnp.stack([gy, gx], axis=-1),
                           (BATCH, H, W, 2)).astype(jnp.float32)

    # Parameters (torch Linear weights stored transposed as (in, out)).
    # NOTE: the PyTorch module zero-inits the AdaRMSNorm linears, out_proj and
    # down_proj; small random weights are used instead so the kernel math is
    # actually exercised (zero init would make both blocks an identity).
    params = {
        'w_norm_attn': 0.02 * jax.random.normal(k1, (COND_FEATURES, D_MODEL), jnp.float32),
        'w_qkv': 0.05 * jax.random.normal(k2, (D_MODEL, 3 * D_MODEL), jnp.float32),
        'w_out': 0.05 * jax.random.normal(k3, (D_MODEL, D_MODEL), jnp.float32),
        'scale': jnp.full((N_HEADS,), 10.0, jnp.float32),
        'freqs': make_freqs(),
        'w_norm_ff': 0.02 * jax.random.normal(k4, (COND_FEATURES, D_MODEL), jnp.float32),
        'w_up': 0.05 * jax.random.normal(k5, (D_MODEL, 2 * D_FF), jnp.float32),
        'w_down': 0.05 * jax.random.normal(k6, (D_FF, D_MODEL), jnp.float32),
    }

    out = global_transformer_layer(x, pos, cond, params)
    out = jax.block_until_ready(out)

    ref = reference(x, pos, cond, params)
    max_diff = float(jnp.max(jnp.abs(out - ref)))
    assert out.shape == (BATCH, H, W, D_MODEL)
    assert jnp.allclose(out, ref, rtol=2e-2, atol=2e-2), f"max abs diff {max_diff}"
    print("KERNEL_OK")
</pallas_src>

<mosaic_0001>
module attributes {stable_mosaic.version = 11 : i64} {
  func.func @_layer_kernel(%arg0: i32, %arg1: memref<64x32xf32, #tpu.memory_space<vmem>>, %arg2: memref<2x64xf32, #tpu.memory_space<vmem>>, %arg3: memref<64x128xf32, #tpu.memory_space<vmem>>, %arg4: memref<64x128xf32, #tpu.memory_space<vmem>>, %arg5: memref<32x96xbf16, #tpu.memory_space<vmem>>, %arg6: memref<32x32xbf16, #tpu.memory_space<vmem>>, %arg7: memref<32x128xbf16, #tpu.memory_space<vmem>>, %arg8: memref<64x32xbf16, #tpu.memory_space<vmem>>, %arg9: memref<64x32xf32, #tpu.memory_space<vmem>>) attributes {dimension_semantics = [#tpu.dimension_semantics<parallel>], iteration_bounds = array<i64: 2>, scalar_prefetch = 0 : i64, scratch_operands = 0 : i64, tpu.core_type = #tpu.core_type<tc>, window_params = [{transform_indices = @transform_0, window_bounds = array<i64: 64, 32>}, {pipeline_mode = #tpu.pipeline_mode<synchronous>, transform_indices = @transform_1, window_bounds = array<i64: 2, 64>}, {transform_indices = @transform_2, window_bounds = array<i64: 64, 128>}, {pipeline_mode = #tpu.pipeline_mode<synchronous>, transform_indices = @transform_3, window_bounds = array<i64: 64, 128>}, {pipeline_mode = #tpu.pipeline_mode<synchronous>, transform_indices = @transform_4, window_bounds = array<i64: 32, 96>}, {pipeline_mode = #tpu.pipeline_mode<synchronous>, transform_indices = @transform_5, window_bounds = array<i64: 32, 32>}, {pipeline_mode = #tpu.pipeline_mode<synchronous>, transform_indices = @transform_6, window_bounds = array<i64: 32, 128>}, {pipeline_mode = #tpu.pipeline_mode<synchronous>, transform_indices = @transform_7, window_bounds = array<i64: 64, 32>}, {transform_indices = @transform_8, window_bounds = array<i64: 64, 32>}]} {
    %c0 = arith.constant 0 : index
    %c0_0 = arith.constant 0 : index
    %0 = vector.load %arg1[%c0, %c0_0] : memref<64x32xf32, #tpu.memory_space<vmem>>, vector<64x32xf32>
    %1 = arith.index_cast %arg0 : i32 to index
    %c0_1 = arith.constant 0 : index
    %2 = vector.load %arg2[%1, %c0_1] : memref<2x64xf32, #tpu.memory_space<vmem>>, vector<1x64xf32>
    %3 = vector.extract_strided_slice %2 {offsets = [0, 0], sizes = [1, 32], strides = [1, 1]} : vector<1x64xf32> to vector<1x32xf32>
    %4 = vector.extract_strided_slice %2 {offsets = [0, 32], sizes = [1, 32], strides = [1, 1]} : vector<1x64xf32> to vector<1x32xf32>
    %c0_2 = arith.constant 0 : index
    %c0_3 = arith.constant 0 : index
    %5 = vector.load %arg3[%c0_2, %c0_3] : memref<64x128xf32, #tpu.memory_space<vmem>>, vector<64x128xf32>
    %6 = vector.extract_strided_slice %5 {offsets = [0, 0], sizes = [64, 64], strides = [1, 1]} : vector<64x128xf32> to vector<64x64xf32>
    %7 = vector.extract_strided_slice %5 {offsets = [0, 64], sizes = [64, 64], strides = [1, 1]} : vector<64x128xf32> to vector<64x64xf32>
    %c0_4 = arith.constant 0 : index
    %c0_5 = arith.constant 0 : index
    %8 = vector.load %arg4[%c0_4, %c0_5] : memref<64x128xf32, #tpu.memory_space<vmem>>, vector<64x128xf32>
    %9 = vector.extract_strided_slice %8 {offsets = [0, 0], sizes = [64, 64], strides = [1, 1]} : vector<64x128xf32> to vector<64x64xf32>
    %10 = vector.extract_strided_slice %8 {offsets = [0, 64], sizes = [64, 64], strides = [1, 1]} : vector<64x128xf32> to vector<64x64xf32>
    %11 = arith.mulf %0, %0 : vector<64x32xf32>
    %cst = arith.constant dense<0.000000e+00> : vector<64xf32>
    %12 = vector.multi_reduction <add>, %11, %cst [1] : vector<64x32xf32> to vector<64xf32>
    %13 = vector.shape_cast %12 : vector<64xf32> to vector<64x1xf32>
    %cst_6 = arith.constant 3.200000e+01 : f32
    %14 = vector.broadcast %cst_6 : f32 to vector<64x1xf32>
    %15 = arith.divf %13, %14 : vector<64x1xf32>
    %cst_7 = arith.constant 9.99999997E-7 : f32
    %16 = vector.broadcast %cst_7 : f32 to vector<64x1xf32>
    %17 = arith.addf %15, %16 : vector<64x1xf32>
    %18 = math.rsqrt %17 : vector<64x1xf32>
    %19 = vector.broadcast %3 : vector<1x32xf32> to vector<64x32xf32>
    %20 = vector.broadcast %18 : vector<64x1xf32> to vector<64x32xf32>
    %21 = arith.mulf %19, %20 : vector<64x32xf32>
    %22 = arith.mulf %0, %21 : vector<64x32xf32>
    %23 = arith.truncf %22 : vector<64x32xf32> to vector<64x32xbf16>
    %c0_8 = arith.constant 0 : index
    %c0_9 = arith.constant 0 : index
    %24 = vector.load %arg5[%c0_8, %c0_9] : memref<32x96xbf16, #tpu.memory_space<vmem>>, vector<32x96xbf16>
    %cst_10 = arith.constant dense<0.000000e+00> : vector<64x96xf32>
    %25 = tpu.matmul %23, %24, %cst_10 {dimension_numbers = #tpu.dot_dimension_numbers<[1], [0], [0], [1], [0, 0, 1, 1], [], []>} : vector<64x32xbf16>, vector<32x96xbf16>, vector<64x96xf32> -> vector<64x96xf32>
    %26 = vector.extract_strided_slice %25 {offsets = [0, 0], sizes = [64, 64], strides = [1, 1]} : vector<64x96xf32> to vector<64x64xf32>
    %27 = vector.extract_strided_slice %25 {offsets = [0, 64], sizes = [64, 32], strides = [1, 1]} : vector<64x96xf32> to vector<64x32xf32>
    %28 = arith.mulf %26, %26 : vector<64x64xf32>
    %cst_11 = arith.constant dense<0.000000e+00> : vector<64x64xf32>
    %29 = tpu.matmul %28, %9, %cst_11 {dimension_numbers = #tpu.dot_dimension_numbers<[1], [0], [0], [1], [0, 0, 1, 1], [], []>} : vector<64x64xf32>, vector<64x64xf32>, vector<64x64xf32> -> vector<64x64xf32>
    %cst_12 = arith.constant 9.99999997E-7 : f32
    %30 = vector.broadcast %cst_12 : f32 to vector<64x64xf32>
    %31 = arith.addf %29, %30 : vector<64x64xf32>
    %32 = math.rsqrt %31 : vector<64x64xf32>
    %33 = arith.mulf %26, %32 : vector<64x64xf32>
    %34 = arith.mulf %33, %6 : vector<64x64xf32>
    %cst_13 = arith.constant dense<0.000000e+00> : vector<64x64xf32>
    %35 = tpu.matmul %33, %10, %cst_13 {dimension_numbers = #tpu.dot_dimension_numbers<[1], [0], [0], [1], [0, 0, 1, 1], [], []>} : vector<64x64xf32>, vector<64x64xf32>, vector<64x64xf32> -> vector<64x64xf32>
    %36 = arith.mulf %35, %7 : vector<64x64xf32>
    %37 = arith.addf %34, %36 : vector<64x64xf32>
    %38 = vector.extract_strided_slice %37 {offsets = [0, 0], sizes = [64, 32], strides = [1, 1]} : vector<64x64xf32> to vector<64x32xf32>
    %39 = vector.extract_strided_slice %37 {offsets = [0, 32], sizes = [64, 32], strides = [1, 1]} : vector<64x64xf32> to vector<64x32xf32>
    %40 = vector.extract_strided_slice %38 {offsets = [0, 0], sizes = [64, 8], strides = [1, 1]} : vector<64x32xf32> to vector<64x8xf32>
    %41 = arith.truncf %40 : vector<64x8xf32> to vector<64x8xbf16>
    %42 = vector.extract_strided_slice %39 {offsets = [0, 0], sizes = [64, 8], strides = [1, 1]} : vector<64x32xf32> to vector<64x8xf32>
    %43 = arith.truncf %42 : vector<64x8xf32> to vector<64x8xbf16>
    %44 = vector.extract_strided_slice %27 {offsets = [0, 0], sizes = [64, 8], strides = [1, 1]} : vector<64x32xf32> to vector<64x8xf32>
    %45 = arith.truncf %44 : vector<64x8xf32> to vector<64x8xbf16>
    %cst_14 = arith.constant dense<0.000000e+00> : vector<64x64xf32>
    %46 = tpu.matmul %41, %43, %cst_14 {dimension_numbers = #tpu.dot_dimension_numbers<[1], [1], [0], [0], [0, 0, 1, 0], [], []>} : vector<64x8xbf16>, vector<64x8xbf16>, vector<64x64xf32> -> vector<64x64xf32>
    %cst_15 = arith.constant dense<0xFF800000> : vector<64xf32>
    %47 = vector.multi_reduction <maximumf>, %46, %cst_15 [1] : vector<64x64xf32> to vector<64xf32>
    %48 = vector.shape_cast %47 : vector<64xf32> to vector<64x1xf32>
    %49 = vector.broadcast %48 : vector<64x1xf32> to vector<64x64xf32>
    %50 = arith.subf %46, %49 : vector<64x64xf32>
    %51 = math.exp %50 : vector<64x64xf32>
    %cst_16 = arith.constant dense<0.000000e+00> : vector<64xf32>
    %52 = vector.multi_reduction <add>, %51, %cst_16 [1] : vector<64x64xf32> to vector<64xf32>
    %53 = vector.shape_cast %52 : vector<64xf32> to vector<64x1xf32>
    %54 = arith.truncf %51 : vector<64x64xf32> to vector<64x64xbf16>
    %cst_17 = arith.constant dense<0.000000e+00> : vector<64x8xf32>
    %55 = tpu.matmul %54, %45, %cst_17 {dimension_numbers = #tpu.dot_dimension_numbers<[1], [0], [0], [1], [0, 0, 1, 1], [], []>} : vector<64x64xbf16>, vector<64x8xbf16>, vector<64x8xf32> -> vector<64x8xf32>
    %56 = tpu.reciprocal %53 {approx = true} : vector<64x1xf32> -> vector<64x1xf32>
    %57 = vector.broadcast %56 : vector<64x1xf32> to vector<64x8xf32>
    %58 = arith.mulf %55, %57 : vector<64x8xf32>
    %59 = vector.extract_strided_slice %38 {offsets = [0, 8], sizes = [64, 8], strides = [1, 1]} : vector<64x32xf32> to vector<64x8xf32>
    %60 = arith.truncf %59 : vector<64x8xf32> to vector<64x8xbf16>
    %61 = vector.extract_strided_slice %39 {offsets = [0, 8], sizes = [64, 8], strides = [1, 1]} : vector<64x32xf32> to vector<64x8xf32>
    %62 = arith.truncf %61 : vector<64x8xf32> to vector<64x8xbf16>
    %63 = vector.extract_strided_slice %27 {offsets = [0, 8], sizes = [64, 8], strides = [1, 1]} : vector<64x32xf32> to vector<64x8xf32>
    %64 = arith.truncf %63 : vector<64x8xf32> to vector<64x8xbf16>
    %cst_18 = arith.constant dense<0.000000e+00> : vector<64x64xf32>
    %65 = tpu.matmul %60, %62, %cst_18 {dimension_numbers = #tpu.dot_dimension_numbers<[1], [1], [0], [0], [0, 0, 1, 0], [], []>} : vector<64x8xbf16>, vector<64x8xbf16>, vector<64x64xf32> -> vector<64x64xf32>
    %cst_19 = arith.constant dense<0xFF800000> : vector<64xf32>
    %66 = vector.multi_reduction <maximumf>, %65, %cst_19 [1] : vector<64x64xf32> to vector<64xf32>
    %67 = vector.shape_cast %66 : vector<64xf32> to vector<64x1xf32>
    %68 = vector.broadcast %67 : vector<64x1xf32> to vector<64x64xf32>
    %69 = arith.subf %65, %68 : vector<64x64xf32>
    %70 = math.exp %69 : vector<64x64xf32>
    %cst_20 = arith.constant dense<0.000000e+00> : vector<64xf32>
    %71 = vector.multi_reduction <add>, %70, %cst_20 [1] : vector<64x64xf32> to vector<64xf32>
    %72 = vector.shape_cast %71 : vector<64xf32> to vector<64x1xf32>
    %73 = arith.truncf %70 : vector<64x64xf32> to vector<64x64xbf16>
    %cst_21 = arith.constant dense<0.000000e+00> : vector<64x8xf32>
    %74 = tpu.matmul %73, %64, %cst_21 {dimension_numbers = #tpu.dot_dimension_numbers<[1], [0], [0], [1], [0, 0, 1, 1], [], []>} : vector<64x64xbf16>, vector<64x8xbf16>, vector<64x8xf32> -> vector<64x8xf32>
    %75 = tpu.reciprocal %72 {approx = true} : vector<64x1xf32> -> vector<64x1xf32>
    %76 = vector.broadcast %75 : vector<64x1xf32> to vector<64x8xf32>
    %77 = arith.mulf %74, %76 : vector<64x8xf32>
    %78 = vector.extract_strided_slice %38 {offsets = [0, 16], sizes = [64, 8], strides = [1, 1]} : vector<64x32xf32> to vector<64x8xf32>
    %79 = arith.truncf %78 : vector<64x8xf32> to vector<64x8xbf16>
    %80 = vector.extract_strided_slice %39 {offsets = [0, 16], sizes = [64, 8], strides = [1, 1]} : vector<64x32xf32> to vector<64x8xf32>
    %81 = arith.truncf %80 : vector<64x8xf32> to vector<64x8xbf16>
    %82 = vector.extract_strided_slice %27 {offsets = [0, 16], sizes = [64, 8], strides = [1, 1]} : vector<64x32xf32> to vector<64x8xf32>
    %83 = arith.truncf %82 : vector<64x8xf32> to vector<64x8xbf16>
    %cst_22 = arith.constant dense<0.000000e+00> : vector<64x64xf32>
    %84 = tpu.matmul %79, %81, %cst_22 {dimension_numbers = #tpu.dot_dimension_numbers<[1], [1], [0], [0], [0, 0, 1, 0], [], []>} : vector<64x8xbf16>, vector<64x8xbf16>, vector<64x64xf32> -> vector<64x64xf32>
    %cst_23 = arith.constant dense<0xFF800000> : vector<64xf32>
    %85 = vector.multi_reduction <maximumf>, %84, %cst_23 [1] : vector<64x64xf32> to vector<64xf32>
    %86 = vector.shape_cast %85 : vector<64xf32> to vector<64x1xf32>
    %87 = vector.broadcast %86 : vector<64x1xf32> to vector<64x64xf32>
    %88 = arith.subf %84, %87 : vector<64x64xf32>
    %89 = math.exp %88 : vector<64x64xf32>
    %cst_24 = arith.constant dense<0.000000e+00> : vector<64xf32>
    %90 = vector.multi_reduction <add>, %89, %cst_24 [1] : vector<64x64xf32> to vector<64xf32>
    %91 = vector.shape_cast %90 : vector<64xf32> to vector<64x1xf32>
    %92 = arith.truncf %89 : vector<64x64xf32> to vector<64x64xbf16>
    %cst_25 = arith.constant dense<0.000000e+00> : vector<64x8xf32>
    %93 = tpu.matmul %92, %83, %cst_25 {dimension_numbers = #tpu.dot_dimension_numbers<[1], [0], [0], [1], [0, 0, 1, 1], [], []>} : vector<64x64xbf16>, vector<64x8xbf16>, vector<64x8xf32> -> vector<64x8xf32>
    %94 = tpu.reciprocal %91 {approx = true} : vector<64x1xf32> -> vector<64x1xf32>
    %95 = vector.broadcast %94 : vector<64x1xf32> to vector<64x8xf32>
    %96 = arith.mulf %93, %95 : vector<64x8xf32>
    %97 = vector.extract_strided_slice %38 {offsets = [0, 24], sizes = [64, 8], strides = [1, 1]} : vector<64x32xf32> to vector<64x8xf32>
    %98 = arith.truncf %97 : vector<64x8xf32> to vector<64x8xbf16>
    %99 = vector.extract_strided_slice %39 {offsets = [0, 24], sizes = [64, 8], strides = [1, 1]} : vector<64x32xf32> to vector<64x8xf32>
    %100 = arith.truncf %99 : vector<64x8xf32> to vector<64x8xbf16>
    %101 = vector.extract_strided_slice %27 {offsets = [0, 24], sizes = [64, 8], strides = [1, 1]} : vector<64x32xf32> to vector<64x8xf32>
    %102 = arith.truncf %101 : vector<64x8xf32> to vector<64x8xbf16>
    %cst_26 = arith.constant dense<0.000000e+00> : vector<64x64xf32>
    %103 = tpu.matmul %98, %100, %cst_26 {dimension_numbers = #tpu.dot_dimension_numbers<[1], [1], [0], [0], [0, 0, 1, 0], [], []>} : vector<64x8xbf16>, vector<64x8xbf16>, vector<64x64xf32> -> vector<64x64xf32>
    %cst_27 = arith.constant dense<0xFF800000> : vector<64xf32>
    %104 = vector.multi_reduction <maximumf>, %103, %cst_27 [1] : vector<64x64xf32> to vector<64xf32>
    %105 = vector.shape_cast %104 : vector<64xf32> to vector<64x1xf32>
    %106 = vector.broadcast %105 : vector<64x1xf32> to vector<64x64xf32>
    %107 = arith.subf %103, %106 : vector<64x64xf32>
    %108 = math.exp %107 : vector<64x64xf32>
    %cst_28 = arith.constant dense<0.000000e+00> : vector<64xf32>
    %109 = vector.multi_reduction <add>, %108, %cst_28 [1] : vector<64x64xf32> to vector<64xf32>
    %110 = vector.shape_cast %109 : vector<64xf32> to vector<64x1xf32>
    %111 = arith.truncf %108 : vector<64x64xf32> to vector<64x64xbf16>
    %cst_29 = arith.constant dense<0.000000e+00> : vector<64x8xf32>
    %112 = tpu.matmul %111, %102, %cst_29 {dimension_numbers = #tpu.dot_dimension_numbers<[1], [0], [0], [1], [0, 0, 1, 1], [], []>} : vector<64x64xbf16>, vector<64x8xbf16>, vector<64x8xf32> -> vector<64x8xf32>
    %113 = tpu.reciprocal %110 {approx = true} : vector<64x1xf32> -> vector<64x1xf32>
    %114 = vector.broadcast %113 : vector<64x1xf32> to vector<64x8xf32>
    %115 = arith.mulf %112, %114 : vector<64x8xf32>
    %116 = tpu.concatenate %58, %77, %96, %115 in 1 : vector<64x8xf32>, vector<64x8xf32>, vector<64x8xf32>, vector<64x8xf32> -> vector<64x32xf32>
    %117 = arith.truncf %116 : vector<64x32xf32> to vector<64x32xbf16>
    %c0_30 = arith.constant 0 : index
    %c0_31 = arith.constant 0 : index
    %118 = vector.load %arg6[%c0_30, %c0_31] : memref<32x32xbf16, #tpu.memory_space<vmem>>, vector<32x32xbf16>
    %cst_32 = arith.constant dense<0.000000e+00> : vector<64x32xf32>
    %119 = tpu.matmul %117, %118, %cst_32 {dimension_numbers = #tpu.dot_dimension_numbers<[1], [0], [0], [1], [0, 0, 1, 1], [], []>} : vector<64x32xbf16>, vector<32x32xbf16>, vector<64x32xf32> -> vector<64x32xf32>
    %120 = arith.addf %0, %119 : vector<64x32xf32>
    %121 = arith.mulf %120, %120 : vector<64x32xf32>
    %cst_33 = arith.constant dense<0.000000e+00> : vector<64xf32>
    %122 = vector.multi_reduction <add>, %121, %cst_33 [1] : vector<64x32xf32> to vector<64xf32>
    %123 = vector.shape_cast %122 : vector<64xf32> to vector<64x1xf32>
    %cst_34 = arith.constant 3.200000e+01 : f32
    %124 = vector.broadcast %cst_34 : f32 to vector<64x1xf32>
    %125 = arith.divf %123, %124 : vector<64x1xf32>
    %cst_35 = arith.constant 9.99999997E-7 : f32
    %126 = vector.broadcast %cst_35 : f32 to vector<64x1xf32>
    %127 = arith.addf %125, %126 : vector<64x1xf32>
    %128 = math.rsqrt %127 : vector<64x1xf32>
    %129 = vector.broadcast %4 : vector<1x32xf32> to vector<64x32xf32>
    %130 = vector.broadcast %128 : vector<64x1xf32> to vector<64x32xf32>
    %131 = arith.mulf %129, %130 : vector<64x32xf32>
    %132 = arith.mulf %120, %131 : vector<64x32xf32>
    %133 = arith.truncf %132 : vector<64x32xf32> to vector<64x32xbf16>
    %c0_36 = arith.constant 0 : index
    %c0_37 = arith.constant 0 : index
    %134 = vector.load %arg7[%c0_36, %c0_37] : memref<32x128xbf16, #tpu.memory_space<vmem>>, vector<32x128xbf16>
    %cst_38 = arith.constant dense<0.000000e+00> : vector<64x128xf32>
    %135 = tpu.matmul %133, %134, %cst_38 {dimension_numbers = #tpu.dot_dimension_numbers<[1], [0], [0], [1], [0, 0, 1, 1], [], []>} : vector<64x32xbf16>, vector<32x128xbf16>, vector<64x128xf32> -> vector<64x128xf32>
    %136 = vector.extract_strided_slice %135 {offsets = [0, 0], sizes = [64, 64], strides = [1, 1]} : vector<64x128xf32> to vector<64x64xf32>
    %137 = vector.extract_strided_slice %135 {offsets = [0, 64], sizes = [64, 64], strides = [1, 1]} : vector<64x128xf32> to vector<64x64xf32>
    %138 = arith.mulf %137, %137 : vector<64x64xf32>
    %139 = arith.mulf %137, %138 : vector<64x64xf32>
    %cst_39 = arith.constant 4.471500e-02 : f32
    %140 = vector.broadcast %cst_39 : f32 to vector<64x64xf32>
    %141 = arith.mulf %140, %139 : vector<64x64xf32>
    %142 = arith.addf %137, %141 : vector<64x64xf32>
    %cst_40 = arith.constant 0.797884583 : f32
    %143 = vector.broadcast %cst_40 : f32 to vector<64x64xf32>
    %144 = arith.mulf %143, %142 : vector<64x64xf32>
    %145 = math.tanh %144 : vector<64x64xf32>
    %cst_41 = arith.constant 1.000000e+00 : f32
    %146 = vector.broadcast %cst_41 : f32 to vector<64x64xf32>
    %147 = arith.addf %146, %145 : vector<64x64xf32>
    %cst_42 = arith.constant 5.000000e-01 : f32
    %148 = vector.broadcast %cst_42 : f32 to vector<64x64xf32>
    %149 = arith.mulf %148, %147 : vector<64x64xf32>
    %150 = arith.mulf %137, %149 : vector<64x64xf32>
    %151 = arith.mulf %136, %150 : vector<64x64xf32>
    %152 = arith.truncf %151 : vector<64x64xf32> to vector<64x64xbf16>
    %c0_43 = arith.constant 0 : index
    %c0_44 = arith.constant 0 : index
    %153 = vector.load %arg8[%c0_43, %c0_44] : memref<64x32xbf16, #tpu.memory_space<vmem>>, vector<64x32xbf16>
    %cst_45 = arith.constant dense<0.000000e+00> : vector<64x32xf32>
    %154 = tpu.matmul %152, %153, %cst_45 {dimension_numbers = #tpu.dot_dimension_numbers<[1], [0], [0], [1], [0, 0, 1, 1], [], []>} : vector<64x64xbf16>, vector<64x32xbf16>, vector<64x32xf32> -> vector<64x32xf32>
    %155 = arith.addf %120, %154 : vector<64x32xf32>
    %c0_46 = arith.constant 0 : index
    %c0_47 = arith.constant 0 : index
    %156 = vector.load %arg9[%c0_46, %c0_47] : memref<64x32xf32, #tpu.memory_space<vmem>>, vector<64x32xf32>
    tpu.vector_store %arg9[%c0_46, %c0_47], %155 {strides = array<i32>} : memref<64x32xf32, #tpu.memory_space<vmem>>, vector<64x32xf32>,
    return
  }
  func.func @transform_0(%arg0: i32) -> (i32, i32) {
    %c0_i32 = arith.constant 0 : i32
    %c0_i32_0 = arith.constant 0 : i32
    return %arg0, %c0_i32 : i32, i32
  }
  func.func @transform_1(%arg0: i32) -> (i32, i32) {
    %c0_i32 = arith.constant 0 : i32
    %c0_i32_0 = arith.constant 0 : i32
    %c0_i32_1 = arith.constant 0 : i32
    return %c0_i32, %c0_i32_0 : i32, i32
  }
  func.func @transform_2(%arg0: i32) -> (i32, i32) {
    %c0_i32 = arith.constant 0 : i32
    %c0_i32_0 = arith.constant 0 : i32
    return %arg0, %c0_i32 : i32, i32
  }
  func.func @transform_3(%arg0: i32) -> (i32, i32) {
    %c0_i32 = arith.constant 0 : i32
    %c0_i32_0 = arith.constant 0 : i32
    %c0_i32_1 = arith.constant 0 : i32
    return %c0_i32, %c0_i32_0 : i32, i32
  }
  func.func @transform_4(%arg0: i32) -> (i32, i32) {
    %c0_i32 = arith.constant 0 : i32
    %c0_i32_0 = arith.constant 0 : i32
    %c0_i32_1 = arith.constant 0 : i32
    return %c0_i32, %c0_i32_0 : i32, i32
  }
  func.func @transform_5(%arg0: i32) -> (i32, i32) {
    %c0_i32 = arith.constant 0 : i32
    %c0_i32_0 = arith.constant 0 : i32
    %c0_i32_1 = arith.constant 0 : i32
    return %c0_i32, %c0_i32_0 : i32, i32
  }
  func.func @transform_6(%arg0: i32) -> (i32, i32) {
    %c0_i32 = arith.constant 0 : i32
    %c0_i32_0 = arith.constant 0 : i32
    %c0_i32_1 = arith.constant 0 : i32
    return %c0_i32, %c0_i32_0 : i32, i32
  }
  func.func @transform_7(%arg0: i32) -> (i32, i32) {
    %c0_i32 = arith.constant 0 : i32
    %c0_i32_0 = arith.constant 0 : i32
    %c0_i32_1 = arith.constant 0 : i32
    return %c0_i32, %c0_i32_0 : i32, i32
  }
  func.func @transform_8(%arg0: i32) -> (i32, i32) {
    %c0_i32 = arith.constant 0 : i32
    %c0_i32_0 = arith.constant 0 : i32
    return %arg0, %c0_i32 : i32, i32
  }
}

</mosaic_0001>

<bundles_post_ra>
// kernel: tpu_custom_call.1
= control target key start
LH: loop header
LB: loop body
LE: loop exit
PB: predicated region body
PF: predicated region fallthrough
CT: control target
= control target key end

     0   :  { %13 = vsyncpa [#allocation3], 0  ;;  %s4779_s0 = inlined_call_operand.vmem [shape: f32[128,32], index: 0, kind: input, shape index: {}]   ;;  %s4780_s1 = inlined_call_operand.vmem [shape: f32[2,64], index: 1, kind: input, shape index: {}]   ;;  %s4781_s2 = inlined_call_operand.vmem [shape: f32[128,128], index: 2, kind: input, shape index: {}]   ;;  %s4782_s3 = inlined_call_operand.vmem [shape: f32[64,128], index: 3, kind: input, shape index: {}]   ;;  %s4783_s4 = inlined_call_operand.vmem [shape: bf16[32,96], index: 4, kind: input, shape index: {}]   ;;  %s4784_s5 = inlined_call_operand.hbm [shape: bf16[32,32], index: 5, kind: input, shape index: {}]   ;;  %s4785_s6 = inlined_call_operand.hbm [shape: bf16[32,128], index: 6, kind: input, shape index: {}]   ;;  %s4786_s7 = inlined_call_operand.vmem [shape: bf16[64,32], index: 7, kind: input, shape index: {}]   ;;  %s4787_s8 = inlined_call_operand.vmem [shape: f32[128,32], index: 8, kind: output, shape index: {}]  }
   0x1   :  { %14 = vsyncpa [#allocation5], 0  ;;  %s3816_s27 = smov 0  }
   0x2 LB: > { %s3822_s28 = sadd.s32 4294967295, %s3751_s27   ;;  %p2849_p0 = scmp.ge.s32.totalorder %s3751_s27, 1  ;;  %s3751_s27 = sphi %s3816_s27, %s20_s27  }
   0x3   : > { %p229_p1 = scmp.lt.s32.totalorder %s3751_s27, 3  ;;  %s3753_s29 = smov [#allocation2]  }
   0x4   : > { %s250_s30 = sshll.u32 %s3753_s29, 4  ;;  %p4788_p3 = scmp.eq.s32.totalorder %s3822_s28, 0  ;;  %s251_s30 = int_to_ptr.vmem [resolvable:$true] %s250_s30 }
   0x5   : > { %p3826_p2 = pnand %p2849_p0, %p229_p1  ;;  %s3754_s10 = smov [#allocation4]  }
   0x6   : > { %s263_s11 = sshll.u32 %s3754_s10, 4  ;;  %s3681_s15 = scalar_lea.hbm %s4784_s5, 256  ;;  %s3839_s11 = int_to_ptr.vmem [resolvable:$true] %s263_s11 }
   0x7   : > { %s4790_s9 = scalar_select %p3826_p2, 1, 0 }
   0x8   : > { %p3353_p4 = pneg %p3826_p2  ;;  %p3682_p6 = scmp.ne.s32.totalorder %s4784_s5, %s3681_s15 }
   0x9   : > { %p3688_p10 = scmp.lt.u32.totalorder %s3681_s15, %s4784_s5 }
   0xa   : > { %p3835_p5 = pnand %p4788_p3, %p3353_p4 }
   0xc   : > { %p3683_p7 = pneg %p3835_p5 }
   0xe   : > { %p3684_p8 = pnand %p3683_p7, %p3682_p6 }
  0x10   : > { %p3685_p9 = pneg %p3684_p8 }
  0x12   : > { %p3690_p11 = pnand %p3688_p10, %p3685_p9 }
  0x14   : > { %3693 = shalt.err (!%p3690_p11)
}
  0x15   : > { %s3694_s20 = scalar_lea.vmem %s251_s30, 256  ;;  %p3702_p1 = scmp.lt.s32.totalorder %s251_s30, %s251_s30 }
  0x16   : > { %p3695_p12 = scmp.ne.s32.totalorder %s251_s30, %s3694_s20  ;;  %p3703_p4 = scmp.lt.s32.totalorder %s3694_s20, %s3694_s20 }
  0x18   : > { %p3697_p13 = pnand %p3695_p12, %p3683_p7  ;;  %p3704_p3 = por %p3703_p4, %p3702_p1 }
  0x1a   : > { %p3698_p0 = pneg %p3697_p13 }
  0x1c   : > { %p3705_p2 = pnand %p3704_p3, %p3698_p0 }
  0x1e   : > { %3708 = shalt.err (!%p3705_p2)
}
  0x1f   : > { %s3755_s21 = smov 64   ;;  %s3756_s22 = smov 4  }
  0x20   : > { %3356 = dma.hbm_to_vmem [thread:$0]  (!%p3835_p5), %s4784_s5, 256, %s251_s30, [#allocation3], %s3755_s21, %s3755_s21, %s3756_s22  }
  0x21   : > { %s3709_s29 = scalar_lea.hbm %s4785_s6, 256 }
  0x22   : > { %p3710_p6 = scmp.ne.s32.totalorder %s4785_s6, %s3709_s29  ;;  %p3716_p8 = scmp.lt.u32.totalorder %s3709_s29, %s4785_s6 }
  0x24   : > { %p3712_p2 = pnand %p3710_p6, %p3683_p7 }
  0x26   : > { %p3713_p3 = pneg %p3712_p2 }
  0x28   : > { %p3718_p9 = pnand %p3716_p8, %p3713_p3 }
  0x2a   : > { %3721 = shalt.err (!%p3718_p9)
}
  0x2b   : > { %s3722_s30 = scalar_lea.vmem %s3839_s11, 256  ;;  %p3730_p13 = scmp.lt.s32.totalorder %s3839_s11, %s3839_s11 }
  0x2c   : > { %p3723_p10 = scmp.ne.s32.totalorder %s3839_s11, %s3722_s30  ;;  %p3731_p0 = scmp.lt.s32.totalorder %s3722_s30, %s3722_s30 }
  0x2e   : > { %p3725_p11 = pnand %p3723_p10, %p3683_p7  ;;  %p3732_p1 = por %p3731_p0, %p3730_p13 }
  0x30   : > { %p3726_p12 = pneg %p3725_p11 }
  0x32   : > { %p3733_p4 = pnand %p3732_p1, %p3726_p12 }
  0x34   : > { %3736 = shalt.err (!%p3733_p4)
}
  0x35   : > { %3359 = dma.hbm_to_vmem [thread:$0]  (!%p3835_p5), %s4785_s6, 256, %s3839_s11, [#allocation5], %s3755_s21, %s3755_s21, %s3756_s22  }
  0x36   : > { %p4792_p6 = scmp.ne.s32.totalorder %s4790_s9, 0 }
  0x37   : > { %p4793_p2 = scmp.eq.s32.totalorder (!%p4792_p6), %s3822_s28, 0 }
  0x38   : > { %300 = sbr.rel (%p4792_p6) target bundleno = 4247 (0x1097), region = 52 }
  0x3f   : > { %3742 = dma.done.wait (%p4793_p2), [#allocation3], 256   ;;  %p4794_p7 = pmov %p4793_p2 }
  0x40   : > { %p4795_p3 = pmov %p4793_p2 }
  0x41   : > { %3744 = vsyncadd (%p4794_p7), [#allocation3], 4294967040 }
  0x42   : > { %3746 = dma.done.wait (%p4795_p3), [#allocation5], 256   ;;  %p4796_p8 = pmov %p4793_p2 }
  0x43   : > { %s2856_s12 = sshll.u32 %s3822_s28, 3  ;;  %vm396_vm0 = vcmask 261120   ;;  %v3470_v24 = vld [vmem:[%s4783_s4] sm:$0xff]   ;;  %v3471_v25 = vld [vmem:[%s4783_s4 + $0x8] sm:$0xff]   ;;  %v3974_v28 = vld [vmem:[%s4782_s3 + $0x10] sm:$0xff]  ;;  %s4003_s20 = scalar_lea.vmem %s4780_s1, %s3822_s28  ;;  %vm571_vm1 = vcmask 523264  }
  0x44   : > { %3748 = vsyncadd (%p4796_p8), [#allocation5], 4294967040  ;;  %p344_p9 = scmp.lt.s32.totalorder %s2856_s12, 15  ;;  %3061 = vmatprep.subr.bf16.mxu0 %v3470_v24  ;;  %v3964_v26 = vld [vmem:[%s4782_s3] sm:$0xff]  ;;  %v3969_v27 = vld [vmem:[%s4782_s3 + $0x8] sm:$0xff]  ;;  %s3757_s24 = smov 64  }
  0x45   : > { %3062 = vmatpush3.bf16.msra.mxu0 %v3470_v24  ;;  %v3390_v29 = vpack.i.bf16 %v3969_v27, %v3964_v26  ;;  %v3297_v30 = vpack.c.bf16 %v3969_v27, %v3964_v26  ;;  %v3983_v31 = vld [vmem:[%s4782_s3 + $0x18] sm:$0xff]  ;;  %v3990_v33 = vld [vmem:[%s4782_s3 + $0x20] sm:$0xff]  ;;  %v3995_v34 = vld [vmem:[%s4782_s3 + $0x28] sm:$0xff]  ;;  %vm954_vm2 = vcmask 64512   ;;  %s3758_s10 = smov 96   ;;  %s3759_s13 = smov 88  }
  0x46   : > { %s4798_s12 = smov (!%p344_p9, %s2856_s12), 15  ;;  %3063 = vmatprep.subr.bf16.mxu0 %v3471_v25  ;;  %v3301_v32 = vpack.c.bf16 %v3983_v31, %v3974_v28  ;;  %v3305_v35 = vpack.c.bf16 %v3995_v34, %v3990_v33  ;;  %v2862_v61 = vld [vmem:[%s4003_s20] ss:$0 sm:$0xff]  ;;  %s3760_s14 = smov 120   ;;  %vm2191_vm3 = vcmask 130048   ;;  %vm2200_vm4 = vcmask 195584  }
  0x47   : > { %s3899_s11 = sshll.u32 %s4798_s12, 3  ;;  %3298 = vmatprep.subr.bf16.mxu1 %v3297_v30  ;;  %s3761_s15 = smov 56  }
  0x48   : > { %s3905_s19 = scalar_lea.vmem %s4779_s0, %s3899_s11  ;;  %3300 = vmatpush3.bf16.msra.mxu1 %v3297_v30  ;;  %s353_s29 = scalar_lea.vmem %s4781_s2, %s3899_s11 }
  0x49   : > { %v3908_v0 = vld [vmem:[%s3905_s19 + $0x10] sm:$0xff]  ;;  %v3911_v1 = vld [vmem:[%s3905_s19] sm:$0xff]  ;;  %v3914_v2 = vld [vmem:[%s3905_s19 + $0x18] sm:$0xff]  ;;  %3064 = vmatpush3.bf16.msra.mxu0 %v3471_v25  ;;  %3302 = vmatprep.subr.bf16.mxu1 %v3301_v32  ;;  %s3762_s30 = smov 80   ;;  %s3763_s16 = smov 112  }
  0x4a   : > { %v390_v3 = vmul.f32 %v3908_v0, %v3908_v0  ;;  %v388_v4 = vmul.f32 %v3911_v1, %v3911_v1  ;;  %v391_v5 = vmul.f32 %v3914_v2, %v3914_v2  ;;  %v3923_v6 = vld [vmem:[%s3905_s19 + $0x8] sm:$0xff]  ;;  %v3929_v8 = vld [vmem:[%s3905_s19 + $0x20] sm:$0xff]  ;;  %v3940_v14 = vld [vmem:[%s3905_s19 + $0x38] sm:$0xff]  ;;  %s3764_s17 = smov 48   ;;  %s3765_s12 = smov 72  }
  0x4b   : > { %v3926_v7 = vld [vmem:[%s3905_s19 + $0x28] sm:$0xff]  ;;  %v389_v9 = vmul.f32 %v3923_v6, %v3923_v6  ;;  %v392_v11 = vmul.f32 %v3929_v8, %v3929_v8  ;;  %v3943_v15 = vld [vmem:[%s3905_s19 + $0x30] sm:$0xff]  ;;  %v395_v20 = vmul.f32 %v3940_v14, %v3940_v14  ;;  %s3766_s9 = smov 104   ;;  %s3767_s18 = smov 40  }
  0x4c   : > { %v393_v10 = vmul.f32 %v3926_v7, %v3926_v7  ;;  %v403_v12 = vsel %vm396_vm0, %v390_v3, 0.0  ;;  %v397_v13 = vsel %vm396_vm0, %v388_v4, 0.0  ;;  %v406_v16 = vsel %vm396_vm0, %v391_v5, 0.0  ;;  %3304 = vmatpush3.bf16.msra.mxu1 %v3301_v32  ;;  %s3768_s28 = smov 8   ;;  %s3769_s21 = smov 16  }
  0x4d   : > { %404 = vadd.xlane.f32.xlu1 %v403_v12  ;;  %398 = vadd.xlane.f32.xlu0 %v397_v13  ;;  %v400_v17 = vsel %vm396_vm0, %v389_v9, 0.0  ;;  %v409_v19 = vsel %vm396_vm0, %v392_v11, 0.0  ;;  %v394_v21 = vmul.f32 %v3943_v15, %v3943_v15  ;;  %v418_v22 = vsel %vm396_vm0, %v395_v20, 0.0  ;;  %s3770_s22 = smov 24  }
  0x4e   : > { %v412_v18 = vsel %vm396_vm0, %v393_v10, 0.0  ;;  %3306 = vmatprep.subr.bf16.mxu1 %v3305_v35 }
  0x4f   : > { %v415_v23 = vsel %vm396_vm0, %v394_v21, 0.0 }
  0x50   : > { %3308 = vmatpush3.bf16.msra.mxu1 %v3305_v35 }
  0x51   : > { %407 = vadd.xlane.f32.xlu1 %v406_v16  ;;  %401 = vadd.xlane.f32.xlu0 %v400_v17 }
  0x55   : > { %413 = vadd.xlane.f32.xlu1 %v412_v18  ;;  %410 = vadd.xlane.f32.xlu0 %v409_v19 }
  0x59   : > { %419 = vadd.xlane.f32.xlu1 %v418_v22  ;;  %416 = vadd.xlane.f32.xlu0 %v415_v23 }
  0x6f   : > { %3391 = vrot.lane.b32.xlu0 %v3390_v29, %s3757_s24 }
  0xda   : > { %v405_v36 = vpop.xlane.xlu1 %404  ;;  %v399_v37 = vpop.xlane.xlu0 %398 }
  0xdb   : > { %v424_v38 = vmul.f32 0.03125, %v405_v36  ;;  %v422_v39 = vmul.f32 0.03125, %v399_v37 }
  0xdd   : > { %v432_v40 = vadd.f32 1e-06, %v424_v38  ;;  %v430_v41 = vadd.f32 1e-06, %v422_v39 }
  0xde   : > { %v408_v42 = vpop.xlane.xlu1 %407  ;;  %v402_v43 = vpop.xlane.xlu0 %401 }
  0xdf   : > { %3480 = vrsqrt.f32 %v432_v40  ;;  %v425_v44 = vmul.f32 0.03125, %v408_v42  ;;  %v423_v45 = vmul.f32 0.03125, %v402_v43 }
  0xe0   : > { %3482 = vrsqrt.f32 %v430_v41 }
  0xe1   : > { %v433_v46 = vadd.f32 1e-06, %v425_v44  ;;  %v431_v47 = vadd.f32 1e-06, %v423_v45 }
  0xe2   : > { %v414_v48 = vpop.xlane.xlu1 %413  ;;  %v411_v49 = vpop.xlane.xlu0 %410 }
  0xe3   : > { %3484 = vrsqrt.f32 %v433_v46  ;;  %v427_v50 = vmul.f32 0.03125, %v414_v48  ;;  %v426_v51 = vmul.f32 0.03125, %v411_v49 }
  0xe4   : > { %3486 = vrsqrt.f32 %v431_v47 }
  0xe5   : > { %v435_v52 = vadd.f32 1e-06, %v427_v50  ;;  %v434_v53 = vadd.f32 1e-06, %v426_v51 }
  0xe6   : > { %v420_v54 = vpop.xlane.xlu1 %419  ;;  %v417_v55 = vpop.xlane.xlu0 %416 }
  0xe7   : > { %3488 = vrsqrt.f32 %v435_v52  ;;  %v429_v56 = vmul.f32 0.03125, %v420_v54  ;;  %v428_v57 = vmul.f32 0.03125, %v417_v55 }
  0xe8   : > { %3490 = vrsqrt.f32 %v434_v53 }
  0xe9   : > { %v3481_v58 = vpop.eup %3480  ;;  %v437_v59 = vadd.f32 1e-06, %v429_v56  ;;  %v436_v60 = vadd.f32 1e-06, %v428_v57 }
  0xea   : > { %v3483_v62 = vpop.eup %3482  ;;  %v452_v63 = vmul.f32 %v3481_v58, %v2862_v61  ;;  %v3392_v51 = vpop.permute.xlu0 %3391 }
  0xeb   : > { %3492 = vrsqrt.f32 %v437_v59  ;;  %v450_v4 = vmul.f32 %v3483_v62, %v2862_v61  ;;  %v3394_v52 = vunpack.i.h.bf16 %v3392_v51  ;;  %v3393_v53 = vunpack.i.l.bf16 %v3392_v51 }
  0xec   : > { %3494 = vrsqrt.f32 %v436_v60  ;;  %v460_v11 = vmul.f32 %v452_v63, %v3908_v0 }
  0xed   : > { %v3485_v3 = vpop.eup %3484  ;;  %v458_v16 = vmul.f32 %v450_v4, %v3911_v1  ;;  %v3313_v57 = vpack.c.bf16 %v3394_v52, %v3393_v53 }
  0xee   : > { %v3487_v5 = vpop.eup %3486  ;;  %v453_v9 = vmul.f32 %v3485_v3, %v2862_v61 }
  0xef   : > { %v451_v10 = vmul.f32 %v3487_v5, %v2862_v61  ;;  %3314 = vmatprep.subr.bf16.mxu0 %v3313_v57 }
  0xf0   : > { %v461_v12 = vmul.f32 %v453_v9, %v3914_v2  ;;  %v4095_v9 = vld [vmem:[%s353_s29 + $0x8] sm:$0xff] }
  0xf1   : > { %v3489_v13 = vpop.eup %3488  ;;  %v459_v17 = vmul.f32 %v451_v10, %v3923_v6  ;;  %v4099_v10 = vld [vmem:[%s353_s29] sm:$0xff] }
  0xf2   : > { %v3491_v18 = vpop.eup %3490  ;;  %v467_v19 = vpack.c.bf16 %v461_v12, %v460_v11  ;;  %v455_v20 = vmul.f32 %v3489_v13, %v2862_v61  ;;  %894 = vrot.lane.b32.xlu0 %v4099_v10, %s3757_s24  ;;  %v4103_v11 = vld [vmem:[%s353_s29 + $0x18] sm:$0xff]  ;;  %v4107_v12 = vld [vmem:[%s353_s29 + $0x10] sm:$0xff]  ;;  %v4111_v13 = vld [vmem:[%s353_s29 + $0x28] sm:$0xff] }
  0xf3   : > { %v466_v21 = vpack.c.bf16 %v459_v17, %v458_v16  ;;  %v454_v22 = vmul.f32 %v3491_v18, %v2862_v61  ;;  %v4115_v16 = vld [vmem:[%s353_s29 + $0x20] sm:$0xff]  ;;  %v4119_v17 = vld [vmem:[%s353_s29 + $0x38] sm:$0xff]  ;;  %v4123_v18 = vld [vmem:[%s353_s29 + $0x30] sm:$0xff] }
  0xf4   : > { %v463_v23 = vmul.f32 %v455_v20, %v3926_v7  ;;  %v386_v7 = vld [vmem:[%s4782_s3 + $0x30] sm:$0xff] }
  0xf5   : > { %v3493_v24 = vpop.eup %3492  ;;  %3065 = vmatprep.mubr.msk.bf16.mxu0 %vm396_vm0, %v466_v21  ;;  %v462_v25 = vmul.f32 %v454_v22, %v3929_v8  ;;  %v387_v8 = vld [vmem:[%s4782_s3 + $0x38] sm:$0xff] }
  0xf6   : > { %v3495_v0 = vpop.eup %3494  ;;  %3066 = vmatmul.mubr.msk.bf16.vlgmr.msra.gmra.mrb[0].mxu0 %vm396_vm0, %v467_v19  ;;  %v457_v2 = vmul.f32 %v3493_v24, %v2862_v61  ;;  %v3309_v36 = vpack.c.bf16 %v387_v8, %v386_v7  ;;  %v3405_v37 = vpack.i.bf16 %v387_v8, %v386_v7  ;;  %898 = vrot.lane.b32.xlu0 %v4107_v12, %s3757_s24 }
  0xf7   : > { %v468_v30 = vpack.c.bf16 %v463_v23, %v462_v25  ;;  %v456_v1 = vmul.f32 %v3495_v0, %v2862_v61  ;;  %3316 = vmatpush3.bf16.msra.mxu0 %v3313_v57 }
  0xf8   : > { %v465_v6 = vmul.f32 %v457_v2, %v3940_v14  ;;  %3310 = vmatprep.subr.bf16.mxu1 %v3309_v36  ;;  %v3395_v14 = vpack.i.bf16 %v3983_v31, %v3974_v28 }
  0xf9   : > { %3069 = vmatprep.mubr.msk.bf16.mxu0 %vm396_vm0, %v468_v30  ;;  %v464_v32 = vmul.f32 %v456_v1, %v3943_v15  ;;  %3312 = vmatpush3.bf16.msra.mxu1 %v3309_v36  ;;  %v3400_v15 = vpack.i.bf16 %v3995_v34, %v3990_v33 }
  0xfa   : > { %3396 = vrot.lane.b32.xlu1 %v3395_v14, %s3757_s24  ;;  %902 = vrot.lane.b32.xlu0 %v4115_v16, %s3757_s24 }
  0xfb   : > { %v469_v35 = vpack.c.bf16 %v465_v6, %v464_v32 }
  0xfe   : > { %3070 = vmatmul.mubr.msk.bf16.gmra.mrb[4].mxu0 %vm396_vm0, %v469_v35  ;;  %3401 = vrot.lane.b32.xlu1 %v3400_v15, %s3757_s24 }
  0xff   : > { %906 = vrot.lane.b32.xlu0 %v4123_v18, %s3757_s24 }
 0x102   : > { %3406 = vrot.lane.b32.xlu1 %v3405_v37, %s3757_s24 }
 0x106   : > { %896 = vrot.lane.b32.xlu1 %v4095_v9, %s3757_s24 }
 0x10a   : > { %900 = vrot.lane.b32.xlu1 %v4103_v11, %s3757_s24 }
 0x10e   : > { %904 = vrot.lane.b32.xlu1 %v4111_v13, %s3757_s24 }
 0x112   : > { %908 = vrot.lane.b32.xlu1 %v4119_v17, %s3757_s24 }
 0x164   : > { %v895_v52 = vpop.permute.xlu0 %894 }
 0x16c   : > { %v3397_v54 = vpop.permute.xlu1 %3396 }
 0x16d   : > { %v3399_v55 = vunpack.i.h.bf16 %v3397_v54  ;;  %v3398_v56 = vunpack.i.l.bf16 %v3397_v54 }
 0x16f   : > { %v3317_v58 = vpack.c.bf16 %v3399_v55, %v3398_v56 }
 0x170   : > { %v3402_v59 = vpop.permute.xlu1 %3401 }
 0x171   : > { %v3404_v60 = vunpack.i.h.bf16 %v3402_v59  ;;  %v3403_v61 = vunpack.i.l.bf16 %v3402_v59  ;;  %3318 = vmatprep.subr.bf16.mxu0 %v3317_v58 }
 0x172   : > { %3320 = vmatpush3.bf16.msra.mxu0 %v3317_v58 }
 0x173   : > { %v3321_v62 = vpack.c.bf16 %v3404_v60, %v3403_v61 }
 0x174   : > { %v3407_v63 = vpop.permute.xlu1 %3406 }
 0x175   : > { %v3409_v3 = vunpack.i.h.bf16 %v3407_v63  ;;  %v3408_v4 = vunpack.i.l.bf16 %v3407_v63  ;;  %3322 = vmatprep.subr.bf16.mxu0 %v3321_v62 }
 0x176   : > { %3324 = vmatpush3.bf16.msra.mxu0 %v3321_v62 }
 0x177   : > { %v3325_v5 = vpack.c.bf16 %v3409_v3, %v3408_v4 }
 0x178   : > { %v897_v51 = vpop.permute.xlu1 %896 }
 0x179   : > { %3326 = vmatprep.subr.bf16.mxu0 %v3325_v5 }
 0x17a   : > { %3328 = vmatpush3.bf16.msra.mxu0 %v3325_v5 }
 0x17c   : > { %v901_v53 = vpop.permute.xlu1 %900 }
 0x1c9   : > { %v4035_v38 = vpop.f32.mrb[0].mxu0 }
 0x1ca   : > { %v4037_v39 = vpop.f32.mrb[1].mxu0  ;;  %v565_v34 = vmul.f32 %v4035_v38, %v4035_v38 }
 0x1cb   : > { %v4039_v28 = vpop.f32.mrb[2].mxu0  ;;  %v563_v26 = vmul.f32 %v4037_v39, %v4037_v39 }
 0x1cc   : > { %v4045_v27 = vpack.c.bf16 %v4039_v28, %v4035_v38  ;;  %v4047_v29 = vpop.f32.mrb[3].mxu0  ;;  %v566_v40 = vmul.f32 %v4039_v28, %v4039_v28 }
 0x1cd   : > { %v564_v31 = vmul.f32 %v4047_v29, %v4047_v29  ;;  %v4053_v33 = vpack.c.bf16 %v4047_v29, %v4037_v39  ;;  %3089 = vmatprep.mubr.msk.f32.mxu1 %vm571_vm1, %v563_v26 }
 0x1cf   : > { %3090 = vmatmul.mubr.msk.f32.vlgmr.msra.gmra.mrb[0].mxu1 %vm571_vm1, %v564_v31 }
 0x1d0   : > { %3092 = vmatprep.mubr.msk.f32.mxu1 %vm571_vm1, %v565_v34 }
 0x1d1   : > { %v4062_v41 = vpop.f32.mrb[4].mxu0 }
 0x1d2   : > { %v4064_v42 = vpop.f32.mrb[5].mxu0  ;;  %v569_v45 = vmul.f32 %v4062_v41, %v4062_v41 }
 0x1d3   : > { %v567_v43 = vmul.f32 %v4064_v42, %v4064_v42  ;;  %v4068_v44 = vpop.f32.mrb[6].mxu0  ;;  %3093 = vmatmul.mubr.msk.f32.gmra.mrb[2].mxu1 %vm571_vm1, %v566_v40 }
 0x1d4   : > { %v4075_v46 = vpack.c.bf16 %v4068_v44, %v4062_v41  ;;  %v4077_v47 = vpop.f32.mrb[7].mxu0  ;;  %v570_v50 = vmul.f32 %v4068_v44, %v4068_v44 }
 0x1d5   : > { %v568_v48 = vmul.f32 %v4077_v47, %v4077_v47  ;;  %v4083_v49 = vpack.c.bf16 %v4077_v47, %v4064_v42  ;;  %3095 = vmatprep.mubr.msk.f32.mxu1 %vm571_vm1, %v567_v43 }
 0x1d7   : > { %3096 = vmatmul.mubr.msk.f32.gmra.mrb[4].mxu1 %vm571_vm1, %v568_v48 }
 0x1d8   : > { %3098 = vmatprep.mubr.msk.f32.mxu1 %vm571_vm1, %v569_v45 }
 0x1db   : > { %3099 = vmatmul.mubr.msk.f32.gmra.mrb[6].mxu1 %vm571_vm1, %v570_v50 }
 0x2a2   : > { %v3091_v19 = vpop.f32.mrb[0].mxu1 }
 0x2a3   : > { %v668_v20 = vadd.f32 1e-06, %v3091_v19  ;;  %v662_v21 = vpop.f32.mrb[1].mxu1 }
 0x2a4   : > { %v663_v22 = vadd.f32 1e-06, %v662_v21 }
 0x2a5   : > { %3496 = vrsqrt.f32 %v668_v20 }
 0x2a6   : > { %3498 = vrsqrt.f32 %v663_v22  ;;  %v3094_v23 = vpop.f32.mrb[2].mxu1 }
 0x2a7   : > { %v678_v24 = vadd.f32 1e-06, %v3094_v23  ;;  %v672_v25 = vpop.f32.mrb[3].mxu1 }
 0x2a8   : > { %v673_v0 = vadd.f32 1e-06, %v672_v25 }
 0x2a9   : > { %3500 = vrsqrt.f32 %v678_v24 }
 0x2aa   : > { %3502 = vrsqrt.f32 %v673_v0  ;;  %v3097_v2 = vpop.f32.mrb[4].mxu1 }
 0x2ab   : > { %v688_v30 = vadd.f32 1e-06, %v3097_v2  ;;  %v682_v1 = vpop.f32.mrb[5].mxu1 }
 0x2ac   : > { %v683_v6 = vadd.f32 1e-06, %v682_v1 }
 0x2ad   : > { %3504 = vrsqrt.f32 %v688_v30 }
 0x2ae   : > { %3506 = vrsqrt.f32 %v683_v6  ;;  %v3100_v32 = vpop.f32.mrb[6].mxu1 }
 0x2af   : > { %v3497_v35 = vpop.eup %3496  ;;  %v698_v7 = vadd.f32 1e-06, %v3100_v32  ;;  %v692_v8 = vpop.f32.mrb[7].mxu1 }
 0x2b0   : > { %v3499_v36 = vpop.eup %3498  ;;  %v710_v14 = vmul.f32 %v3497_v35, %v4047_v29  ;;  %v693_v15 = vadd.f32 1e-06, %v692_v8 }
 0x2b1   : > { %3508 = vrsqrt.f32 %v698_v7  ;;  %v709_v37 = vmul.f32 %v3499_v36, %v4037_v39 }
 0x2b2   : > { %3510 = vrsqrt.f32 %v693_v15 }
 0x2b3   : > { %v3501_v26 = vpop.eup %3500  ;;  %3117 = vmatprep.mubr.msk.f32.mxu0 %vm571_vm1, %v709_v37  ;;  %v717_v57 = vmul.f32 %v709_v37, %v4099_v10 }
 0x2b4   : > { %v3503_v31 = vpop.eup %3502  ;;  %3118 = vmatmul.mubr.msk.f32.vlgmr.msra.gmra.mrb[8].mxu0 %vm571_vm1, %v710_v14  ;;  %v712_v34 = vmul.f32 %v3501_v26, %v4039_v28 }
 0x2b5   : > { %v711_v40 = vmul.f32 %v3503_v31, %v4035_v38 }
 0x2b6   : > { %v720_v61 = vmul.f32 %v712_v34, %v4103_v11 }
 0x2b7   : > { %v3505_v43 = vpop.eup %3504  ;;  %3120 = vmatprep.mubr.msk.f32.mxu0 %vm571_vm1, %v711_v40  ;;  %v719_v4 = vmul.f32 %v711_v40, %v4107_v12 }
 0x2b8   : > { %v3507_v45 = vpop.eup %3506  ;;  %3121 = vmatmul.mubr.msk.f32.gmra.mrb[10].mxu0 %vm571_vm1, %v712_v34  ;;  %v714_v29 = vmul.f32 %v3505_v43, %v4077_v47  ;;  %v899_v47 = vpop.permute.xlu0 %898 }
 0x2b9   : > { %v713_v39 = vmul.f32 %v3507_v45, %v4064_v42  ;;  %v718_v42 = vmul.f32 %v710_v14, %v4095_v9 }
 0x2ba   : > { %v722_v11 = vmul.f32 %v714_v29, %v4111_v13 }
 0x2bb   : > { %v3509_v48 = vpop.eup %3508  ;;  %3123 = vmatprep.mubr.msk.f32.mxu0 %vm571_vm1, %v713_v39  ;;  %v721_v23 = vmul.f32 %v713_v39, %v4115_v16 }
 0x2bc   : > { %v3511_v50 = vpop.eup %3510  ;;  %3124 = vmatmul.mubr.msk.f32.gmra.mrb[12].mxu0 %vm571_vm1, %v714_v29  ;;  %v716_v28 = vmul.f32 %v3509_v48, %v4068_v44  ;;  %v903_v3 = vpop.permute.xlu0 %902 }
 0x2bd   : > { %v715_v38 = vmul.f32 %v3511_v50, %v4062_v41  ;;  %v905_v41 = vpop.permute.xlu1 %904 }
 0x2be   : > { %v724_v6 = vmul.f32 %v716_v28, %v4119_v17 }
 0x2bf   : > { %3126 = vmatprep.mubr.msk.f32.mxu0 %vm571_vm1, %v715_v38  ;;  %v723_v13 = vmul.f32 %v715_v38, %v4123_v18 }
 0x2c0   : > { %3127 = vmatmul.mubr.msk.f32.gmra.mrb[14].mxu0 %vm571_vm1, %v716_v28  ;;  %v907_v2 = vpop.permute.xlu0 %906 }
 0x2c1   : > { %v909_v25 = vpop.permute.xlu1 %908 }
 0x387   : > { %v3119_v54 = vpop.f32.mrb[8].mxu0 }
 0x388   : > { %v919_v55 = vmul.f32 %v3119_v54, %v897_v51  ;;  %v847_v56 = vpop.f32.mrb[9].mxu0 }
 0x389   : > { %v918_v58 = vmul.f32 %v895_v52, %v847_v56 }
 0x38a   : > { %v927_v59 = vadd.f32 %v919_v55, %v718_v42 }
 0x38b   : > { %v926_v44 = vadd.f32 %v918_v58, %v717_v57  ;;  %v3122_v60 = vpop.f32.mrb[10].mxu0 }
 0x38c   : > { %v921_v62 = vmul.f32 %v3122_v60, %v901_v53  ;;  %v857_v63 = vpop.f32.mrb[11].mxu0 }
 0x38d   : > { %v4147_v5 = vpack.c.bf16 %v927_v59, %v926_v44  ;;  %v920_v9 = vmul.f32 %v899_v47, %v857_v63 }
 0x38e   : > { %v929_v19 = vadd.f32 %v921_v62, %v720_v61 }
 0x38f   : > { %v928_v20 = vadd.f32 %v920_v9, %v719_v4  ;;  %946 = vrot.lane.b32.xlu0 %v4147_v5, %s3758_s10  ;;  %v3125_v10 = vpop.f32.mrb[12].mxu0  ;;  %3137 = vmatprep.mubr.msk.bf16.mxu1 %vm954_vm2, %v4147_v5 }
 0x390   : > { %v923_v21 = vmul.f32 %v3125_v10, %v905_v41  ;;  %v867_v22 = vpop.f32.mrb[13].mxu0 }
 0x391   : > { %v4155_v12 = vpack.c.bf16 %v929_v19, %v928_v20  ;;  %v922_v24 = vmul.f32 %v903_v3, %v867_v22 }
 0x392   : > { %v931_v0 = vadd.f32 %v923_v21, %v722_v11 }
 0x393   : > { %v930_v30 = vadd.f32 %v922_v24, %v721_v23  ;;  %948 = vrot.lane.b32.xlu1 %v4155_v12, %s3758_s10  ;;  %v3128_v1 = vpop.f32.mrb[14].mxu0 }
 0x394   : > { %v925_v32 = vmul.f32 %v3128_v1, %v909_v25  ;;  %v877_v35 = vpop.f32.mrb[15].mxu0 }
 0x395   : > { %v4161_v7 = vpack.c.bf16 %v931_v0, %v930_v30  ;;  %v924_v16 = vmul.f32 %v907_v2, %v877_v35 }
 0x396   : > { %v933_v8 = vadd.f32 %v925_v32, %v724_v6 }
 0x397   : > { %v932_v36 = vadd.f32 %v924_v16, %v723_v13  ;;  %950 = vrot.lane.b32.xlu0 %v4161_v7, %s3758_s10 }
 0x399   : > { %v4165_v14 = vpack.c.bf16 %v933_v8, %v932_v36 }
 0x39b   : > { %1124 = vrot.lane.b32.xlu0 %v4053_v33, %s3757_s24  ;;  %952 = vrot.lane.b32.xlu1 %v4165_v14, %s3758_s10 }
 0x39f   : > { %1126 = vrot.lane.b32.xlu1 %v4045_v27, %s3757_s24 }
 0x3a3   : > { %1128 = vrot.lane.b32.xlu1 %v4083_v49, %s3757_s24 }
 0x3a7   : > { %1130 = vrot.lane.b32.xlu1 %v4075_v46, %s3757_s24 }
 0x401   : > { %v947_v17 = vpop.permute.xlu0 %946 }
 0x402   : > { %3329 = vmatprep.subr.msk.bf16.mxu1 %vm954_vm2, %v947_v17  ;;  %v968_v18 = vsel %vm954_vm2, %v947_v17, 0 }
 0x403   : > { %3130 = vmatpush3.bf16.xpose.msra.mxu1 %v968_v18 }
 0x405   : > { %v949_v15 = vpop.permute.xlu1 %948 }
 0x406   : > { %3330 = vmatprep.subr.msk.bf16.mxu1 %vm954_vm2, %v949_v15  ;;  %v971_v26 = vsel %vm954_vm2, %v949_v15, 0 }
 0x409   : > { %v951_v37 = vpop.permute.xlu0 %950 }
 0x40a   : > { %v974_v43 = vsel %vm954_vm2, %v951_v37, 0 }
 0x40b   : > { %3132 = vmatpush3.bf16.xpose.msra.mxu1 %v971_v26 }
 0x40c   : > { %3331 = vmatprep.subr.msk.bf16.mxu1 %vm954_vm2, %v951_v37 }
 0x40d   : > { %v1125_v31 = vpop.permute.xlu0 %1124  ;;  %v953_v34 = vpop.permute.xlu1 %952 }
 0x40e   : > { %3145 = vmatprep.subr.bf16.mxu0 %v1125_v31  ;;  %v977_v39 = vsel %vm954_vm2, %v953_v34, 0 }
 0x40f   : > { %3146 = vmatpush3.bf16.msra.mxu0 %v1125_v31 }
 0x411   : > { %v1127_v40 = vpop.permute.xlu1 %1126 }
 0x412   : > { %3147 = vmatprep.subr.bf16.mxu0 %v1127_v40 }
 0x413   : > { %3134 = vmatpush3.bf16.xpose.msra.mxu1 %v974_v43  ;;  %3148 = vmatpush3.bf16.msra.mxu0 %v1127_v40 }
 0x414   : > { %3332 = vmatprep.subr.msk.bf16.mxu1 %vm954_vm2, %v953_v34 }
 0x415   : > { %v1129_v45 = vpop.permute.xlu1 %1128 }
 0x416   : > { %3149 = vmatprep.subr.bf16.mxu0 %v1129_v45 }
 0x417   : > { %3150 = vmatpush3.bf16.msra.mxu0 %v1129_v45 }
 0x419   : > { %v1131_v29 = vpop.permute.xlu1 %1130 }
 0x41a   : > { %3151 = vmatprep.subr.bf16.mxu0 %v1131_v29 }
 0x41b   : > { %3136 = vmatpush3.bf16.xpose.msra.mxu1 %v977_v39  ;;  %3152 = vmatpush3.bf16.msra.mxu0 %v1131_v29 }
 0x422   : > { %3138 = vmatmul.mubr.msk.bf16.vlgmr.msra.gmra.mrb[8].mxu1 %vm954_vm2, %v4155_v12 }
 0x423   : > { %3141 = vmatprep.mubr.msk.bf16.mxu1 %vm954_vm2, %v4161_v7 }
 0x42a   : > { %3142 = vmatmul.mubr.msk.bf16.gmra.mrb[12].mxu1 %vm954_vm2, %v4165_v14 }
 0x4f5   : > { %v3139_v48 = vpop.f32.mrb[8].mxu1 }
 0x4f6   : > { %v1013_v50 = vpop.f32.mrb[9].mxu1  ;;  %v1050_v28 = vsel %vm571_vm1, %v3139_v48, -inf }
 0x4f7   : > { %1051 = vmax.xlane.f32.xlu0 %v1050_v28  ;;  %v3140_v38 = vpop.f32.mrb[10].mxu1  ;;  %v1044_v53 = vsel %vm571_vm1, %v1013_v50, -inf }
 0x4f8   : > { %v1016_v51 = vpop.f32.mrb[11].mxu1  ;;  %v1053_v42 = vsel %vm571_vm1, %v3140_v38, -inf }
 0x4f9   : > { %v1047_v52 = vsel %vm571_vm1, %v1016_v51, -inf }
 0x4fa   : > { %1048 = vmax.xlane.f32.xlu1 %v1047_v52 }
 0x4fb   : > { %1045 = vmax.xlane.f32.xlu0 %v1044_v53 }
 0x4fd   : > { %v3143_v47 = vpop.f32.mrb[12].mxu1 }
 0x4fe   : > { %v4194_v54 = vpop.f32.mrb[13].mxu1  ;;  %v1062_v57 = vsel %vm571_vm1, %v3143_v47, -inf }
 0x4ff   : > { %1054 = vmax.xlane.f32.xlu0 %v1053_v42  ;;  %v3144_v55 = vpop.f32.mrb[14].mxu1  ;;  %v1056_v58 = vsel %vm571_vm1, %v4194_v54, -inf }
 0x500   : > { %v4197_v56 = vpop.f32.mrb[15].mxu1  ;;  %v1065_v59 = vsel %vm571_vm1, %v3144_v55, -inf }
 0x501   : > { %v1059_v44 = vsel %vm571_vm1, %v4197_v56, -inf }
 0x503   : > { %1063 = vmax.xlane.f32.xlu0 %v1062_v57 }
 0x507   : > { %1057 = vmax.xlane.f32.xlu0 %v1056_v58 }
 0x50b   : > { %1239 = vrot.lane.b32.xlu1 %v4155_v12, %s3759_s13  ;;  %1066 = vmax.xlane.f32.xlu0 %v1065_v59 }
 0x50f   : > { %1241 = vrot.lane.b32.xlu1 %v4161_v7, %s3759_s13 }
 0x521   : > { %1237 = vrot.lane.b32.xlu0 %v4147_v5, %s3759_s13 }
 0x525   : > { %1229 = vrot.lane.b32.xlu0 %v4147_v5, %s3760_s14 }
 0x529   : > { %1233 = vrot.lane.b32.xlu0 %v4161_v7, %s3760_s14 }
 0x52d   : > { %1410 = vrot.lane.b32.xlu0 %v4053_v33, %s3761_s15 }
 0x533   : > { %1060 = vmax.xlane.f32.xlu1 %v1059_v44 }
 0x544   : > { %1243 = vrot.lane.b32.xlu1 %v4165_v14, %s3759_s13 }
 0x548   : > { %1231 = vrot.lane.b32.xlu1 %v4155_v12, %s3760_s14 }
 0x54c   : > { %1235 = vrot.lane.b32.xlu1 %v4165_v14, %s3760_s14 }
 0x550   : > { %1412 = vrot.lane.b32.xlu1 %v4045_v27, %s3761_s15 }
 0x554   : > { %1414 = vrot.lane.b32.xlu1 %v4083_v49, %s3761_s15 }
 0x558   : > { %1416 = vrot.lane.b32.xlu1 %v4075_v46, %s3761_s15  ;;  %s359_s15 = scalar_lea.vmem %s4787_s8, %s3899_s11 }
 0x584   : > { %v1052_v60 = vpop.xlane.xlu0 %1051 }
 0x585   : > { %v1070_v61 = vsub.f32 %v3139_v48, %v1052_v60 }
 0x587   : > { %v1049_v41 = vpop.xlane.xlu1 %1048  ;;  %v1080_v19 = vmul.f32 1.442695, %v1070_v61 }
 0x588   : > { %v1069_v62 = vsub.f32 %v1016_v51, %v1049_v41  ;;  %v1046_v63 = vpop.xlane.xlu0 %1045 }
 0x589   : > { %v1068_v3 = vsub.f32 %v1013_v50, %v1046_v63 }
 0x58a   : > { %v1078_v4 = vmul.f32 1.442695, %v1069_v62 }
 0x58b   : > { %v1076_v9 = vmul.f32 1.442695, %v1068_v3  ;;  %v1240_v36 = vpop.permute.xlu1 %1239 }
 0x58c   : > { %3512 = vpow2.f32 %v1078_v4  ;;  %v1055_v20 = vpop.xlane.xlu0 %1054  ;;  %v1261_v37 = vsel %vm954_vm2, %v1240_v36, 0 }
 0x58d   : > { %3514 = vpow2.f32 %v1076_v9  ;;  %v1071_v10 = vsub.f32 %v3140_v38, %v1055_v20 }
 0x58e   : > { %3516 = vpow2.f32 %v1080_v19 }
 0x58f   : > { %v1082_v11 = vmul.f32 1.442695, %v1071_v10  ;;  %v1242_v31 = vpop.permute.xlu1 %1241 }
 0x590   : > { %v1064_v21 = vpop.xlane.xlu0 %1063  ;;  %v1264_v43 = vsel %vm954_vm2, %v1242_v31, 0 }
 0x591   : > { %3518 = vpow2.f32 %v1082_v11  ;;  %v1074_v22 = vsub.f32 %v3143_v47, %v1064_v21 }
 0x593   : > { %v1088_v0 = vmul.f32 1.442695, %v1074_v22 }
 0x594   : > { %v1058_v23 = vpop.xlane.xlu0 %1057 }
 0x595   : > { %3520 = vpow2.f32 %v1088_v0  ;;  %v1072_v45 = vsub.f32 %v4194_v54, %v1058_v23 }
 0x596   : > { %v4217_v24 = vpop.eup %3512 }
 0x597   : > { %v4219_v25 = vpop.eup %3514  ;;  %v1084_v29 = vmul.f32 1.442695, %v1072_v45 }
 0x598   : > { %v1067_v2 = vpop.xlane.xlu0 %1066  ;;  %v1116_v30 = vpack.c.bf16 %v4217_v24, %v4219_v25  ;;  %v4223_v6 = vpop.eup %3516 }
 0x599   : > { %v1075_v1 = vsub.f32 %v3144_v55, %v1067_v2 }
 0x59a   : > { %3153 = vmatprep.mubr.msk.bf16.mxu0 %vm571_vm1, %v1116_v30 }
 0x59b   : > { %v4226_v32 = vpop.eup %3518  ;;  %v1090_v35 = vmul.f32 1.442695, %v1075_v1 }
 0x59c   : > { %v1117_v13 = vpack.c.bf16 %v4226_v32, %v4223_v6  ;;  %v1238_v16 = vpop.permute.xlu0 %1237 }
 0x59d   : > { %3522 = vpow2.f32 %v1090_v35  ;;  %3333 = vmatprep.subr.msk.bf16.mxu0 %vm954_vm2, %v1238_v16  ;;  %v1258_v8 = vsel %vm954_vm2, %v1238_v16, 0 }
 0x59e   : > { %3154 = vmatmul.mubr.msk.bf16.vlgmr.msra.gmra.mrb[16].mxu0 %vm571_vm1, %v1117_v13  ;;  %3524 = vpow2.f32 %v1084_v29 }
 0x59f   : > { %3162 = vmatpush3.bf16.xpose.msra.mxu0 %v1258_v8  ;;  %v4234_v15 = vpop.eup %3520 }
 0x5a0   : > { %3334 = vmatprep.subr.msk.bf16.mxu0 %vm954_vm2, %v1240_v36  ;;  %v1230_v17 = vpop.permute.xlu0 %1229 }
 0x5a4   : > { %v1234_v18 = vpop.permute.xlu0 %1233 }
 0x5a7   : > { %v4237_v26 = vpop.eup %3522  ;;  %3164 = vmatpush3.bf16.xpose.msra.mxu0 %v1261_v37 }
 0x5a8   : > { %3335 = vmatprep.subr.msk.bf16.mxu0 %vm954_vm2, %v1242_v31  ;;  %v1411_v34 = vpop.permute.xlu0 %1410  ;;  %v1119_v40 = vpack.c.bf16 %v4237_v26, %v4234_v15  ;;  %v4247_v53 = vpop.eup %3524 }
 0x5a9   : > { %3177 = vmatprep.subr.bf16.mxu1 %v1411_v34 }
 0x5aa   : > { %3178 = vmatpush3.bf16.msra.mxu1 %v1411_v34 }
 0x5af   : > { %3166 = vmatpush3.bf16.xpose.msra.mxu0 %v1264_v43 }
 0x5c0   : > { %v1061_v39 = vpop.xlane.xlu1 %1060 }
 0x5c1   : > { %v1073_v48 = vsub.f32 %v4197_v56, %v1061_v39 }
 0x5c3   : > { %v1086_v50 = vmul.f32 1.442695, %v1073_v48 }
 0x5c4   : > { %v1244_v28 = vpop.permute.xlu1 %1243 }
 0x5c5   : > { %3526 = vpow2.f32 %v1086_v50  ;;  %3336 = vmatprep.subr.msk.bf16.mxu0 %vm954_vm2, %v1244_v28  ;;  %v1267_v38 = vsel %vm954_vm2, %v1244_v28, 0 }
 0x5c6   : > { %3168 = vmatpush3.bf16.xpose.msra.mxu0 %v1267_v38 }
 0x5c8   : > { %v1232_v51 = vpop.permute.xlu1 %1231 }
 0x5cc   : > { %v1236_v52 = vpop.permute.xlu1 %1235 }
 0x5cf   : > { %v4249_v47 = vpop.eup %3526 }
 0x5d0   : > { %v1413_v54 = vpop.permute.xlu1 %1412  ;;  %v1118_v42 = vpack.c.bf16 %v4249_v47, %v4247_v53 }
 0x5d1   : > { %3179 = vmatprep.subr.bf16.mxu1 %v1413_v54 }
 0x5d2   : > { %3157 = vmatprep.mubr.msk.bf16.mxu0 %vm571_vm1, %v1118_v42  ;;  %3180 = vmatpush3.bf16.msra.mxu1 %v1413_v54 }
 0x5d3   : > { %3158 = vmatmul.mubr.msk.bf16.gmra.mrb[20].mxu0 %vm571_vm1, %v1119_v40 }
 0x5d4   : > { %3169 = vmatprep.mubr.msk.bf16.mxu0 %vm954_vm2, %v1230_v17  ;;  %v1415_v55 = vpop.permute.xlu1 %1414 }
 0x5d5   : > { %3181 = vmatprep.subr.bf16.mxu1 %v1415_v55 }
 0x5d6   : > { %3182 = vmatpush3.bf16.msra.mxu1 %v1415_v55 }
 0x5d8   : > { %v1417_v56 = vpop.permute.xlu1 %1416 }
 0x5d9   : > { %3183 = vmatprep.subr.bf16.mxu1 %v1417_v56 }
 0x5da   : > { %3184 = vmatpush3.bf16.msra.mxu1 %v1417_v56 }
 0x5db   : > { %3170 = vmatmul.mubr.msk.bf16.vlgmr.msra.gmra.mrb[24].mxu0 %vm954_vm2, %v1232_v51 }
 0x5dc   : > { %3173 = vmatprep.mubr.msk.bf16.mxu0 %vm954_vm2, %v1234_v18 }
 0x5e3   : > { %3174 = vmatmul.mubr.msk.bf16.gmra.mrb[28].mxu0 %vm954_vm2, %v1236_v52 }
 0x671   : > { %v4259_v57 = vpop.f32.mrb[16].mxu0 }
 0x672   : > { %v4261_v58 = vpop.f32.mrb[17].mxu0 }
 0x673   : > { %v4263_v59 = vpop.f32.mrb[18].mxu0 }
 0x674   : > { %v4265_v44 = vpop.f32.mrb[19].mxu0 }
 0x6a6   : > { %v4267_v60 = vpop.f32.mrb[20].mxu0 }
 0x6a7   : > { %v4269_v41 = vpop.f32.mrb[21].mxu0 }
 0x6a8   : > { %v4271_v61 = vpop.f32.mrb[22].mxu0 }
 0x6a9   : > { %v4273_v62 = vpop.f32.mrb[23].mxu0 }
 0x6ae   : > { %v3171_v63 = vpop.f32.mrb[24].mxu0 }
 0x6af   : > { %v1303_v3 = vpop.f32.mrb[25].mxu0  ;;  %v1340_v4 = vsel %vm571_vm1, %v3171_v63, -inf }
 0x6b0   : > { %1341 = vmax.xlane.f32.xlu0 %v1340_v4  ;;  %v3172_v9 = vpop.f32.mrb[26].mxu0  ;;  %v1334_v10 = vsel %vm571_vm1, %v1303_v3, -inf }
 0x6b1   : > { %v1306_v19 = vpop.f32.mrb[27].mxu0  ;;  %v1343_v22 = vsel %vm571_vm1, %v3172_v9, -inf }
 0x6b2   : > { %v1337_v20 = vsel %vm571_vm1, %v1306_v19, -inf }
 0x6b3   : > { %1338 = vmax.xlane.f32.xlu1 %v1337_v20 }
 0x6b4   : > { %1335 = vmax.xlane.f32.xlu0 %v1334_v10 }
 0x6b6   : > { %v3175_v11 = vpop.f32.mrb[28].mxu0 }
 0x6b7   : > { %v4278_v21 = vpop.f32.mrb[29].mxu0  ;;  %v1352_v2 = vsel %vm571_vm1, %v3175_v11, -inf }
 0x6b8   : > { %1344 = vmax.xlane.f32.xlu0 %v1343_v22  ;;  %v3176_v23 = vpop.f32.mrb[30].mxu0  ;;  %v1346_v30 = vsel %vm571_vm1, %v4278_v21, -inf }
 0x6b9   : > { %v4281_v0 = vpop.f32.mrb[31].mxu0  ;;  %v1355_v1 = vsel %vm571_vm1, %v3176_v23, -inf }
 0x6ba   : > { %v1349_v35 = vsel %vm571_vm1, %v4281_v0, -inf }
 0x6bc   : > { %1353 = vmax.xlane.f32.xlu0 %v1352_v2 }
 0x6c0   : > { %1347 = vmax.xlane.f32.xlu0 %v1346_v30 }
 0x6c4   : > { %1525 = vrot.lane.b32.xlu1 %v4155_v12, %s3762_s30  ;;  %1356 = vmax.xlane.f32.xlu0 %v1355_v1 }
 0x6c8   : > { %1527 = vrot.lane.b32.xlu1 %v4161_v7, %s3762_s30 }
 0x6da   : > { %1523 = vrot.lane.b32.xlu0 %v4147_v5, %s3762_s30 }
 0x6de   : > { %1515 = vrot.lane.b32.xlu0 %v4147_v5, %s3763_s16 }
 0x6e2   : > { %1519 = vrot.lane.b32.xlu0 %v4161_v7, %s3763_s16 }
 0x6e6   : > { %1696 = vrot.lane.b32.xlu0 %v4053_v33, %s3764_s17 }
 0x6ec   : > { %1350 = vmax.xlane.f32.xlu1 %v1349_v35 }
 0x6fd   : > { %1529 = vrot.lane.b32.xlu1 %v4165_v14, %s3762_s30 }
 0x701   : > { %1517 = vrot.lane.b32.xlu1 %v4155_v12, %s3763_s16 }
 0x705   : > { %1521 = vrot.lane.b32.xlu1 %v4165_v14, %s3763_s16 }
 0x709   : > { %1698 = vrot.lane.b32.xlu1 %v4045_v27, %s3764_s17 }
 0x70d   : > { %1700 = vrot.lane.b32.xlu1 %v4083_v49, %s3764_s17 }
 0x711   : > { %1702 = vrot.lane.b32.xlu1 %v4075_v46, %s3764_s17 }
 0x73d   : > { %v1342_v13 = vpop.xlane.xlu0 %1341 }
 0x73e   : > { %v1360_v8 = vsub.f32 %v3171_v63, %v1342_v13 }
 0x740   : > { %v1339_v16 = vpop.xlane.xlu1 %1338  ;;  %v1370_v34 = vmul.f32 1.442695, %v1360_v8 }
 0x741   : > { %v1359_v36 = vsub.f32 %v1306_v19, %v1339_v16  ;;  %v1336_v17 = vpop.xlane.xlu0 %1335 }
 0x742   : > { %v1358_v18 = vsub.f32 %v1303_v3, %v1336_v17 }
 0x743   : > { %v1368_v37 = vmul.f32 1.442695, %v1359_v36 }
 0x744   : > { %v1366_v31 = vmul.f32 1.442695, %v1358_v18 }
 0x745   : > { %3528 = vpow2.f32 %v1368_v37  ;;  %v1345_v40 = vpop.xlane.xlu0 %1344 }
 0x746   : > { %3530 = vpow2.f32 %v1366_v31  ;;  %v1361_v43 = vsub.f32 %v3172_v9, %v1345_v40  ;;  %v1526_v9 = vpop.permute.xlu1 %1525 }
 0x747   : > { %3532 = vpow2.f32 %v1370_v34 }
 0x748   : > { %v1372_v45 = vmul.f32 1.442695, %v1361_v43 }
 0x749   : > { %v1354_v29 = vpop.xlane.xlu0 %1353 }
 0x74a   : > { %3534 = vpow2.f32 %v1372_v45  ;;  %v1364_v39 = vsub.f32 %v3175_v11, %v1354_v29  ;;  %v1547_v11 = vsel %vm954_vm2, %v1526_v9, 0 }
 0x74c   : > { %v1378_v38 = vmul.f32 1.442695, %v1364_v39 }
 0x74d   : > { %v1348_v48 = vpop.xlane.xlu0 %1347 }
 0x74e   : > { %3536 = vpow2.f32 %v1378_v38  ;;  %v1362_v35 = vsub.f32 %v4278_v21, %v1348_v48 }
 0x74f   : > { %v4301_v50 = vpop.eup %3528 }
 0x750   : > { %v4303_v28 = vpop.eup %3530  ;;  %v1374_v13 = vmul.f32 1.442695, %v1362_v35 }
 0x751   : > { %v1357_v51 = vpop.xlane.xlu0 %1356  ;;  %v1406_v52 = vpack.c.bf16 %v4301_v50, %v4303_v28  ;;  %v4307_v42 = vpop.eup %3532 }
 0x752   : > { %v1365_v54 = vsub.f32 %v3176_v23, %v1357_v51  ;;  %v1528_v23 = vpop.permute.xlu1 %1527 }
 0x753   : > { %3185 = vmatprep.mubr.msk.bf16.mxu1 %vm571_vm1, %v1406_v52  ;;  %v1550_v1 = vsel %vm954_vm2, %v1528_v23, 0 }
 0x754   : > { %v4310_v55 = vpop.eup %3534  ;;  %v1380_v56 = vmul.f32 1.442695, %v1365_v54 }
 0x755   : > { %v1407_v63 = vpack.c.bf16 %v4310_v55, %v4307_v42  ;;  %v1524_v3 = vpop.permute.xlu0 %1523 }
 0x756   : > { %3538 = vpow2.f32 %v1380_v56  ;;  %3337 = vmatprep.subr.msk.bf16.mxu1 %vm954_vm2, %v1524_v3  ;;  %v1544_v4 = vsel %vm954_vm2, %v1524_v3, 0 }
 0x757   : > { %3186 = vmatmul.mubr.msk.bf16.vlgmr.msra.gmra.mrb[16].mxu1 %vm571_vm1, %v1407_v63  ;;  %3540 = vpow2.f32 %v1374_v13 }
 0x758   : > { %3194 = vmatpush3.bf16.xpose.msra.mxu1 %v1544_v4  ;;  %v4318_v10 = vpop.eup %3536 }
 0x759   : > { %3338 = vmatprep.subr.msk.bf16.mxu1 %vm954_vm2, %v1526_v9  ;;  %v1516_v19 = vpop.permute.xlu0 %1515 }
 0x75d   : > { %v1520_v20 = vpop.permute.xlu0 %1519 }
 0x760   : > { %v4321_v22 = vpop.eup %3538  ;;  %3196 = vmatpush3.bf16.xpose.msra.mxu1 %v1547_v11 }
 0x761   : > { %3339 = vmatprep.subr.msk.bf16.mxu1 %vm954_vm2, %v1528_v23  ;;  %v1697_v2 = vpop.permute.xlu0 %1696  ;;  %v1409_v30 = vpack.c.bf16 %v4321_v22, %v4318_v10  ;;  %v4331_v34 = vpop.eup %3540 }
 0x762   : > { %3209 = vmatprep.subr.bf16.mxu0 %v1697_v2 }
 0x763   : > { %3210 = vmatpush3.bf16.msra.mxu0 %v1697_v2 }
 0x768   : > { %3198 = vmatpush3.bf16.xpose.msra.mxu1 %v1550_v1 }
 0x779   : > { %v1351_v16 = vpop.xlane.xlu1 %1350 }
 0x77a   : > { %v1363_v8 = vsub.f32 %v4281_v0, %v1351_v16 }
 0x77c   : > { %v1376_v36 = vmul.f32 1.442695, %v1363_v8 }
 0x77d   : > { %v1530_v17 = vpop.permute.xlu1 %1529 }
 0x77e   : > { %3542 = vpow2.f32 %v1376_v36  ;;  %3340 = vmatprep.subr.msk.bf16.mxu1 %vm954_vm2, %v1530_v17  ;;  %v1553_v18 = vsel %vm954_vm2, %v1530_v17, 0 }
 0x77f   : > { %3200 = vmatpush3.bf16.xpose.msra.mxu1 %v1553_v18 }
 0x781   : > { %v1518_v37 = vpop.permute.xlu1 %1517 }
 0x785   : > { %v1522_v31 = vpop.permute.xlu1 %1521 }
 0x788   : > { %v4333_v40 = vpop.eup %3542 }
 0x789   : > { %v1699_v21 = vpop.permute.xlu1 %1698  ;;  %v1408_v43 = vpack.c.bf16 %v4333_v40, %v4331_v34 }
 0x78a   : > { %3211 = vmatprep.subr.bf16.mxu0 %v1699_v21 }
 0x78b   : > { %3189 = vmatprep.mubr.msk.bf16.mxu1 %vm571_vm1, %v1408_v43  ;;  %3212 = vmatpush3.bf16.msra.mxu0 %v1699_v21 }
 0x78c   : > { %3190 = vmatmul.mubr.msk.bf16.gmra.mrb[20].mxu1 %vm571_vm1, %v1409_v30 }
 0x78d   : > { %3201 = vmatprep.mubr.msk.bf16.mxu1 %vm954_vm2, %v1516_v19  ;;  %v1701_v0 = vpop.permute.xlu1 %1700 }
 0x78e   : > { %3213 = vmatprep.subr.bf16.mxu0 %v1701_v0 }
 0x78f   : > { %3214 = vmatpush3.bf16.msra.mxu0 %v1701_v0 }
 0x791   : > { %v1703_v45 = vpop.permute.xlu1 %1702 }
 0x792   : > { %3215 = vmatprep.subr.bf16.mxu0 %v1703_v45 }
 0x793   : > { %3216 = vmatpush3.bf16.msra.mxu0 %v1703_v45 }
 0x794   : > { %3202 = vmatmul.mubr.msk.bf16.vlgmr.msra.gmra.mrb[24].mxu1 %vm954_vm2, %v1518_v37 }
 0x795   : > { %3205 = vmatprep.mubr.msk.bf16.mxu1 %vm954_vm2, %v1520_v20 }
 0x79c   : > { %3206 = vmatmul.mubr.msk.bf16.gmra.mrb[28].mxu1 %vm954_vm2, %v1522_v31 }
 0x82a   : > { %v4343_v29 = vpop.f32.mrb[16].mxu1 }
 0x82b   : > { %v4345_v39 = vpop.f32.mrb[17].mxu1 }
 0x82c   : > { %v4347_v48 = vpop.f32.mrb[18].mxu1 }
 0x82d   : > { %v4349_v38 = vpop.f32.mrb[19].mxu1 }
 0x85f   : > { %v4351_v51 = vpop.f32.mrb[20].mxu1 }
 0x860   : > { %v4353_v52 = vpop.f32.mrb[21].mxu1 }
 0x861   : > { %v4355_v54 = vpop.f32.mrb[22].mxu1 }
 0x862   : > { %v4357_v56 = vpop.f32.mrb[23].mxu1 }
 0x867   : > { %v3203_v63 = vpop.f32.mrb[24].mxu1 }
 0x868   : > { %v1589_v3 = vpop.f32.mrb[25].mxu1  ;;  %v1626_v4 = vsel %vm571_vm1, %v3203_v63, -inf }
 0x869   : > { %1627 = vmax.xlane.f32.xlu0 %v1626_v4  ;;  %v3204_v9 = vpop.f32.mrb[26].mxu1  ;;  %v1620_v11 = vsel %vm571_vm1, %v1589_v3, -inf }
 0x86a   : > { %v1592_v19 = vpop.f32.mrb[27].mxu1  ;;  %v1629_v30 = vsel %vm571_vm1, %v3204_v9, -inf }
 0x86b   : > { %v1623_v20 = vsel %vm571_vm1, %v1592_v19, -inf }
 0x86c   : > { %1624 = vmax.xlane.f32.xlu1 %v1623_v20 }
 0x86d   : > { %1621 = vmax.xlane.f32.xlu0 %v1620_v11 }
 0x86f   : > { %v3207_v23 = vpop.f32.mrb[28].mxu1 }
 0x870   : > { %v4362_v2 = vpop.f32.mrb[29].mxu1  ;;  %v1638_v13 = vsel %vm571_vm1, %v3207_v23, -inf }
 0x871   : > { %1630 = vmax.xlane.f32.xlu0 %v1629_v30  ;;  %v3208_v1 = vpop.f32.mrb[30].mxu1  ;;  %v1632_v16 = vsel %vm571_vm1, %v4362_v2, -inf }
 0x872   : > { %v4365_v35 = vpop.f32.mrb[31].mxu1  ;;  %v1641_v8 = vsel %vm571_vm1, %v3208_v1, -inf }
 0x873   : > { %v1635_v36 = vsel %vm571_vm1, %v4365_v35, -inf }
 0x875   : > { %1639 = vmax.xlane.f32.xlu0 %v1638_v13 }
 0x879   : > { %1633 = vmax.xlane.f32.xlu0 %v1632_v16 }
 0x87d   : > { %1811 = vrot.lane.b32.xlu1 %v4155_v12, %s3765_s12  ;;  %1642 = vmax.xlane.f32.xlu0 %v1641_v8 }
 0x881   : > { %1813 = vrot.lane.b32.xlu1 %v4161_v7, %s3765_s12 }
 0x893   : > { %1809 = vrot.lane.b32.xlu0 %v4147_v5, %s3765_s12 }
 0x897   : > { %1801 = vrot.lane.b32.xlu0 %v4147_v5, %s3766_s9 }
 0x89b   : > { %1805 = vrot.lane.b32.xlu0 %v4161_v7, %s3766_s9 }
 0x8a5   : > { %1636 = vmax.xlane.f32.xlu1 %v1635_v36 }
 0x8b6   : > { %1815 = vrot.lane.b32.xlu1 %v4165_v14, %s3765_s12 }
 0x8ba   : > { %1803 = vrot.lane.b32.xlu1 %v4155_v12, %s3766_s9 }
 0x8be   : > { %1807 = vrot.lane.b32.xlu1 %v4165_v14, %s3766_s9 }
 0x8f6   : > { %v1628_v17 = vpop.xlane.xlu0 %1627 }
 0x8f7   : > { %v1646_v37 = vsub.f32 %v3203_v63, %v1628_v17 }
 0x8f9   : > { %v1625_v18 = vpop.xlane.xlu1 %1624  ;;  %v1656_v45 = vmul.f32 1.442695, %v1646_v37 }
 0x8fa   : > { %v1645_v31 = vsub.f32 %v1592_v19, %v1625_v18  ;;  %v1622_v21 = vpop.xlane.xlu0 %1621 }
 0x8fb   : > { %v1644_v43 = vsub.f32 %v1589_v3, %v1622_v21 }
 0x8fc   : > { %v1654_v0 = vmul.f32 1.442695, %v1645_v31 }
 0x8fd   : > { %v1652_v5 = vmul.f32 1.442695, %v1644_v43 }
 0x8fe   : > { %3544 = vpow2.f32 %v1654_v0  ;;  %v1631_v7 = vpop.xlane.xlu0 %1630 }
 0x8ff   : > { %3546 = vpow2.f32 %v1652_v5  ;;  %v1647_v4 = vsub.f32 %v3204_v9, %v1631_v7 }
 0x900   : > { %3548 = vpow2.f32 %v1656_v45 }
 0x901   : > { %v1658_v20 = vmul.f32 1.442695, %v1647_v4 }
 0x902   : > { %v1640_v11 = vpop.xlane.xlu0 %1639 }
 0x903   : > { %3550 = vpow2.f32 %v1658_v20  ;;  %v1650_v12 = vsub.f32 %v3207_v23, %v1640_v11 }
 0x905   : > { %v1664_v63 = vmul.f32 1.442695, %v1650_v12 }
 0x906   : > { %v1634_v30 = vpop.xlane.xlu0 %1633 }
 0x907   : > { %3552 = vpow2.f32 %v1664_v63  ;;  %v1648_v45 = vsub.f32 %v4362_v2, %v1634_v30 }
 0x908   : > { %v4381_v14 = vpop.eup %3544 }
 0x909   : > { %v4383_v13 = vpop.eup %3546  ;;  %v1660_v7 = vmul.f32 1.442695, %v1648_v45 }
 0x90a   : > { %v1643_v19 = vpop.xlane.xlu0 %1642  ;;  %v1692_v3 = vpack.c.bf16 %v4381_v14, %v4383_v13  ;;  %v4387_v8 = vpop.eup %3548 }
 0x90b   : > { %v1651_v16 = vsub.f32 %v3208_v1, %v1643_v19  ;;  %v1812_v1 = vpop.permute.xlu1 %1811 }
 0x90c   : > { %3217 = vmatprep.mubr.msk.bf16.mxu0 %vm571_vm1, %v1692_v3  ;;  %v1833_v31 = vsel %vm954_vm2, %v1812_v1, 0 }
 0x90d   : > { %v4390_v9 = vpop.eup %3550  ;;  %v1666_v36 = vmul.f32 1.442695, %v1651_v16 }
 0x90e   : > { %v1693_v23 = vpack.c.bf16 %v4390_v9, %v4387_v8  ;;  %v1810_v17 = vpop.permute.xlu0 %1809 }
 0x90f   : > { %3554 = vpow2.f32 %v1666_v36  ;;  %v1830_v18 = vsel %vm954_vm2, %v1810_v17, 0  ;;  %3341 = vmatprep.subr.msk.bf16.mxu0 %vm954_vm2, %v1810_v17  ;;  %v1814_v43 = vpop.permute.xlu1 %1813 }
 0x910   : > { %3218 = vmatmul.mubr.msk.bf16.vlgmr.msra.gmra.mrb[32].mxu0 %vm571_vm1, %v1693_v23  ;;  %v1836_v5 = vsel %vm954_vm2, %v1814_v43, 0  ;;  %3556 = vpow2.f32 %v1660_v7 }
 0x911   : > { %3226 = vmatpush3.bf16.xpose.msra.mxu0 %v1830_v18  ;;  %v4398_v37 = vpop.eup %3552 }
 0x912   : > { %3342 = vmatprep.subr.msk.bf16.mxu0 %vm954_vm2, %v1812_v1  ;;  %v1802_v30 = vpop.permute.xlu0 %1801 }
 0x916   : > { %v1806_v16 = vpop.permute.xlu0 %1805 }
 0x919   : > { %v4401_v21 = vpop.eup %3554  ;;  %3228 = vmatpush3.bf16.xpose.msra.mxu0 %v1833_v31 }
 0x91a   : > { %3343 = vmatprep.subr.msk.bf16.mxu0 %vm954_vm2, %v1814_v43  ;;  %v1695_v0 = vpack.c.bf16 %v4401_v21, %v4398_v37  ;;  %v4411_v19 = vpop.eup %3556 }
 0x921   : > { %3230 = vmatpush3.bf16.xpose.msra.mxu0 %v1836_v5 }
 0x932   : > { %v1637_v4 = vpop.xlane.xlu1 %1636 }
 0x933   : > { %v1649_v20 = vsub.f32 %v4365_v35, %v1637_v4 }
 0x935   : > { %v1662_v11 = vmul.f32 1.442695, %v1649_v20 }
 0x936   : > { %v1816_v12 = vpop.permute.xlu1 %1815 }
 0x937   : > { %3558 = vpow2.f32 %v1662_v11  ;;  %v1839_v63 = vsel %vm954_vm2, %v1816_v12, 0  ;;  %3344 = vmatprep.subr.msk.bf16.mxu0 %vm954_vm2, %v1816_v12 }
 0x938   : > { %3232 = vmatpush3.bf16.xpose.msra.mxu0 %v1839_v63 }
 0x93a   : > { %v1804_v35 = vpop.permute.xlu1 %1803 }
 0x93e   : > { %v1808_v36 = vpop.permute.xlu1 %1807 }
 0x941   : > { %v4413_v3 = vpop.eup %3558 }
 0x942   : > { %v1694_v2 = vpack.c.bf16 %v4413_v3, %v4411_v19 }
 0x944   : > { %3221 = vmatprep.mubr.msk.bf16.mxu0 %vm571_vm1, %v1694_v2 }
 0x945   : > { %3222 = vmatmul.mubr.msk.bf16.gmra.mrb[36].mxu0 %vm571_vm1, %v1695_v0 }
 0x946   : > { %3233 = vmatprep.mubr.msk.bf16.mxu0 %vm954_vm2, %v1802_v30 }
 0x94d   : > { %3234 = vmatmul.mubr.msk.bf16.vlgmr.msra.gmra.mrb[40].mxu0 %vm954_vm2, %v1804_v35 }
 0x94e   : > { %3237 = vmatprep.mubr.msk.bf16.mxu0 %vm954_vm2, %v1806_v16 }
 0x955   : > { %3238 = vmatmul.mubr.msk.bf16.gmra.mrb[44].mxu0 %vm954_vm2, %v1808_v36 }
 0x9e3   : > { %v4423_v23 = vpop.f32.mrb[32].mxu0 }
 0x9e4   : > { %v4425_v17 = vpop.f32.mrb[33].mxu0 }
 0x9e5   : > { %v4427_v18 = vpop.f32.mrb[34].mxu0 }
 0x9e6   : > { %v4429_v1 = vpop.f32.mrb[35].mxu0 }
 0xa18   : > { %v4431_v31 = vpop.f32.mrb[36].mxu0 }
 0xa19   : > { %v4433_v43 = vpop.f32.mrb[37].mxu0 }
 0xa1a   : > { %v4435_v0 = vpop.f32.mrb[38].mxu0 }
 0xa1b   : > { %v4437_v5 = vpop.f32.mrb[39].mxu0 }
 0xa20   : > { %v3235_v45 = vpop.f32.mrb[40].mxu0 }
 0xa21   : > { %v4439_v7 = vpop.f32.mrb[41].mxu0  ;;  %v1912_v4 = vsel %vm571_vm1, %v3235_v45, -inf }
 0xa22   : > { %1913 = vmax.xlane.f32.xlu0 %v1912_v4  ;;  %v4442_v20 = vpop.f32.mrb[42].mxu0  ;;  %v1906_v63 = vsel %vm571_vm1, %v4439_v7, -inf }
 0xa23   : > { %v1878_v11 = vpop.f32.mrb[43].mxu0  ;;  %v1915_v35 = vsel %vm571_vm1, %v4442_v20, -inf }
 0xa24   : > { %v1909_v12 = vsel %vm571_vm1, %v1878_v11, -inf }
 0xa25   : > { %1910 = vmax.xlane.f32.xlu1 %v1909_v12 }
 0xa26   : > { %1907 = vmax.xlane.f32.xlu0 %v1906_v63 }
 0xa28   : > { %v4447_v2 = vpop.f32.mrb[44].mxu0 }
 0xa29   : > { %v4449_v30 = vpop.f32.mrb[45].mxu0  ;;  %v1924_v4 = vsel %vm571_vm1, %v4447_v2, -inf }
 0xa2a   : > { %1916 = vmax.xlane.f32.xlu0 %v1915_v35  ;;  %v4453_v16 = vpop.f32.mrb[46].mxu0  ;;  %v1918_v12 = vsel %vm571_vm1, %v4449_v30, -inf }
 0xa2b   : > { %v4455_v36 = vpop.f32.mrb[47].mxu0  ;;  %v1927_v63 = vsel %vm571_vm1, %v4453_v16, -inf }
 0xa2c   : > { %v1921_v35 = vsel %vm571_vm1, %v4455_v36, -inf }
 0xa2e   : > { %1925 = vmax.xlane.f32.xlu0 %v1924_v4  ;;  %v1382_v4 = vsel %vm571_vm1, %v4303_v28, 0.0  ;;  %v1394_v28 = vsel %vm571_vm1, %v4331_v34, 0.0  ;;  %v1677_v34 = vsel %vm571_vm1, %v4390_v9, 0.0 }
 0xa32   : > { %1919 = vmax.xlane.f32.xlu0 %v1918_v12  ;;  %v1388_v12 = vsel %vm571_vm1, %v4307_v42, 0.0  ;;  %v1400_v42 = vsel %vm571_vm1, %v4318_v10, 0.0  ;;  %v1397_v10 = vsel %vm571_vm1, %v4333_v40, 0.0 }
 0xa36   : > { %1984 = vrot.lane.b32.xlu1 %v4045_v27, %s3767_s18  ;;  %v1391_v27 = vsel %vm571_vm1, %v4310_v55, 0.0  ;;  %v1680_v55 = vsel %vm571_vm1, %v4411_v19, 0.0 }
 0xa3a   : > { %1986 = vrot.lane.b32.xlu1 %v4083_v49, %s3767_s18  ;;  %v1674_v49 = vsel %vm571_vm1, %v4387_v8, 0.0  ;;  %v1403_v8 = vsel %vm571_vm1, %v4321_v22, 0.0 }
 0xa48   : > { %1982 = vrot.lane.b32.xlu0 %v4053_v33, %s3767_s18  ;;  %v1668_v33 = vsel %vm571_vm1, %v4383_v13, 0.0  ;;  %v1385_v13 = vsel %vm571_vm1, %v4301_v50, 0.0  ;;  %v1683_v50 = vsel %vm571_vm1, %v4413_v3, 0.0 }
 0xa5e   : > { %1928 = vmax.xlane.f32.xlu1 %v1927_v63 }
 0xa62   : > { %1922 = vmax.xlane.f32.xlu1 %v1921_v35 }
 0xa67   : > { %1383 = vadd.xlane.f32.xlu0 %v1382_v4 }
 0xa6b   : > { %1389 = vadd.xlane.f32.xlu0 %v1388_v12 }
 0xa6f   : > { %1392 = vadd.xlane.f32.xlu0 %v1391_v27 }
 0xa73   : > { %1669 = vadd.xlane.f32.xlu0 %v1668_v33  ;;  %1988 = vrot.lane.b32.xlu1 %v4075_v46, %s3767_s18  ;;  %v1671_v46 = vsel %vm571_vm1, %v4381_v14, 0.0 }
 0xa77   : > { %1675 = vadd.xlane.f32.xlu0 %v1674_v49 }
 0xa7b   : > { %1395 = vadd.xlane.f32.xlu0 %v1394_v28 }
 0xa7f   : > { %1401 = vadd.xlane.f32.xlu0 %v1400_v42 }
 0xa83   : > { %1681 = vadd.xlane.f32.xlu0 %v1680_v55 }
 0xa97   : > { %1386 = vadd.xlane.f32.xlu1 %v1385_v13 }
 0xa9b   : > { %1672 = vadd.xlane.f32.xlu1 %v1671_v46 }
 0xa9f   : > { %1678 = vadd.xlane.f32.xlu1 %v1677_v34 }
 0xaa3   : > { %1398 = vadd.xlane.f32.xlu1 %v1397_v10 }
 0xaa7   : > { %1404 = vadd.xlane.f32.xlu1 %v1403_v8 }
 0xaab   : > { %1684 = vadd.xlane.f32.xlu1 %v1683_v50 }
 0xaaf   : > { %v1914_v19 = vpop.xlane.xlu0 %1913 }
 0xab0   : > { %v1932_v63 = vsub.f32 %v3235_v45, %v1914_v19  ;;  %v1686_v19 = vsel %vm571_vm1, %v4398_v37, 0.0 }
 0xab2   : > { %v1942_v14 = vmul.f32 1.442695, %v1932_v63  ;;  %v1911_v35 = vpop.xlane.xlu1 %1910 }
 0xab3   : > { %v1931_v4 = vsub.f32 %v1878_v11, %v1911_v35  ;;  %v1908_v12 = vpop.xlane.xlu0 %1907 }
 0xab4   : > { %3560 = vpow2.f32 %v1942_v14  ;;  %v1930_v9 = vsub.f32 %v4439_v7, %v1908_v12 }
 0xab5   : > { %v1940_v27 = vmul.f32 1.442695, %v1931_v4 }
 0xab6   : > { %v1938_v40 = vmul.f32 1.442695, %v1930_v9  ;;  %v1985_v10 = vpop.permute.xlu1 %1984  ;;  %v1689_v9 = vsel %vm571_vm1, %v4401_v21, 0.0  ;;  %v1110_v21 = vsel %vm571_vm1, %v4234_v15, 0.0 }
 0xab7   : > { %3562 = vpow2.f32 %v1940_v27  ;;  %v1917_v33 = vpop.xlane.xlu0 %1916 }
 0xab8   : > { %3564 = vpow2.f32 %v1938_v40  ;;  %v1933_v22 = vsub.f32 %v4442_v20, %v1917_v33  ;;  %v1092_v40 = vsel %vm571_vm1, %v4219_v25, 0.0  ;;  %v1098_v33 = vsel %vm571_vm1, %v4223_v6, 0.0 }
 0xaba   : > { %v1944_v49 = vmul.f32 1.442695, %v1933_v22  ;;  %v1987_v14 = vpop.permute.xlu1 %1986  ;;  %v1104_v22 = vsel %vm571_vm1, %v4247_v53, 0.0 }
 0xabb   : > { %v1926_v28 = vpop.xlane.xlu0 %1925 }
 0xabc   : > { %3566 = vpow2.f32 %v1944_v49  ;;  %v1936_v45 = vsub.f32 %v4447_v2, %v1926_v28 }
 0xabe   : > { %v4499_v3 = vpop.eup %3560  ;;  %v1950_v46 = vmul.f32 1.442695, %v1936_v45 }
 0xabf   : > { %v1920_v42 = vpop.xlane.xlu0 %1919  ;;  %v1960_v11 = vsel %vm571_vm1, %v4499_v3, 0.0 }
 0xac0   : > { %v1934_v7 = vsub.f32 %v4449_v30, %v1920_v42  ;;  %1961 = vadd.xlane.f32.xlu0 %v1960_v11 }
 0xac1   : > { %v3563_v55 = vpop.eup %3562 }
 0xac2   : > { %v3565_v13 = vpop.eup %3564  ;;  %v1946_v34 = vmul.f32 1.442695, %v1934_v7  ;;  %v1957_v35 = vsel %vm571_vm1, %v3563_v55, 0.0 }
 0xac3   : > { %v1983_v20 = vpop.permute.xlu0 %1982  ;;  %v1954_v8 = vsel %vm571_vm1, %v3565_v13, 0.0  ;;  %v1978_v50 = vpack.c.bf16 %v3563_v55, %v3565_v13 }
 0xac4   : > { %3568 = vpow2.f32 %v1946_v34  ;;  %1955 = vadd.xlane.f32.xlu0 %v1954_v8  ;;  %3241 = vmatprep.subr.bf16.mxu1 %v1983_v20 }
 0xac5   : > { %3242 = vmatpush3.bf16.msra.mxu1 %v1983_v20  ;;  %3249 = vmatprep.mubr.msk.bf16.mxu1 %vm571_vm1, %v1978_v50  ;;  %3570 = vpow2.f32 %v1950_v46  ;;  %v1095_v20 = vsel %vm571_vm1, %v4217_v24, 0.0 }
 0xac6   : > { %v3567_v2 = vpop.eup %3566  ;;  %3243 = vmatprep.subr.bf16.mxu1 %v1985_v10 }
 0xac7   : > { %v1979_v30 = vpack.c.bf16 %v3567_v2, %v4499_v3  ;;  %v1963_v63 = vsel %vm571_vm1, %v3567_v2, 0.0 }
 0xac8   : > { %1687 = vadd.xlane.f32.xlu0 %v1686_v19  ;;  %1964 = vadd.xlane.f32.xlu1 %v1963_v63  ;;  %v1107_v19 = vsel %vm571_vm1, %v4249_v47, 0.0  ;;  %v1113_v63 = vsel %vm571_vm1, %v4237_v26, 0.0 }
 0xac9   : > { %3244 = vmatpush3.bf16.msra.mxu1 %v1985_v10 }
 0xaca   : > { %3245 = vmatprep.subr.bf16.mxu1 %v1987_v14 }
 0xacc   : > { %1958 = vadd.xlane.f32.xlu1 %v1957_v35 }
 0xacd   : > { %3246 = vmatpush3.bf16.msra.mxu1 %v1987_v14 }
 0xace   : > { %v3569_v4 = vpop.eup %3568 }
 0xacf   : > { %v1966_v12 = vsel %vm571_vm1, %v3569_v4, 0.0  ;;  %v3571_v27 = vpop.eup %3570 }
 0xad0   : > { %1967 = vadd.xlane.f32.xlu0 %v1966_v12  ;;  %1690 = vadd.xlane.f32.xlu1 %v1689_v9  ;;  %v1972_v37 = vsel %vm571_vm1, %v3571_v27, 0.0 }
 0xad4   : > { %1973 = vadd.xlane.f32.xlu0 %v1972_v37 }
 0xad8   : > { %1093 = vadd.xlane.f32.xlu0 %v1092_v40 }
 0xadc   : > { %1099 = vadd.xlane.f32.xlu0 %v1098_v33 }
 0xae0   : > { %1105 = vadd.xlane.f32.xlu0 %v1104_v22 }
 0xae4   : > { %1111 = vadd.xlane.f32.xlu0 %v1110_v21 }
 0xaeb   : > { %v1929_v49 = vpop.xlane.xlu1 %1928 }
 0xaec   : > { %v1937_v28 = vsub.f32 %v4453_v16, %v1929_v49 }
 0xaee   : > { %v1952_v3 = vmul.f32 1.442695, %v1937_v28 }
 0xaef   : > { %v1923_v45 = vpop.xlane.xlu1 %1922 }
 0xaf0   : > { %3572 = vpow2.f32 %v1952_v3  ;;  %v1935_v25 = vsub.f32 %v4455_v36, %v1923_v45 }
 0xaf2   : > { %v1948_v42 = vmul.f32 1.442695, %v1935_v25 }
 0xaf3   : > { %v1989_v11 = vpop.permute.xlu1 %1988 }
 0xaf4   : > { %3574 = vpow2.f32 %v1948_v42  ;;  %v1384_v6 = vpop.xlane.xlu0 %1383  ;;  %3247 = vmatprep.subr.bf16.mxu1 %v1989_v11 }
 0xaf5   : > { %3248 = vmatpush3.bf16.msra.mxu1 %v1989_v11 }
 0xaf8   : > { %v1390_v53 = vpop.xlane.xlu0 %1389  ;;  %3250 = vmatmul.mubr.msk.bf16.vlgmr.msra.gmra.mrb[32].mxu1 %vm571_vm1, %v1979_v30  ;;  %v1101_v30 = vsel %vm571_vm1, %v4226_v32, 0.0 }
 0xaf9   : > { %3576 = vrcp.f32 %v1390_v53 }
 0xafa   : > { %v3573_v7 = vpop.eup %3572 }
 0xafb   : > { %v1981_v15 = vpack.c.bf16 %v3573_v7, %v3571_v27  ;;  %v1975_v36 = vsel %vm571_vm1, %v3573_v7, 0.0 }
 0xafc   : > { %v1393_v55 = vpop.xlane.xlu0 %1392 }
 0xafd   : > { %3578 = vrcp.f32 %v1393_v55 }
 0xafe   : > { %v3575_v16 = vpop.eup %3574  ;;  %3580 = vrcp.f32 %v1384_v6 }
 0xaff   : > { %v1969_v13 = vsel %vm571_vm1, %v3575_v16, 0.0  ;;  %v1980_v46 = vpack.c.bf16 %v3575_v16, %v3569_v4 }
 0xb00   : > { %1970 = vadd.xlane.f32.xlu1 %v1969_v13  ;;  %v1670_v14 = vpop.xlane.xlu0 %1669 }
 0xb01   : > { %3253 = vmatprep.mubr.msk.bf16.mxu1 %vm571_vm1, %v1980_v46 }
 0xb02   : > { %3254 = vmatmul.mubr.msk.bf16.gmra.mrb[36].mxu1 %vm571_vm1, %v1981_v15 }
 0xb03   : > { %v3577_v34 = vpop.eup %3576 }
 0xb04   : > { %1976 = vadd.xlane.f32.xlu1 %v1975_v36  ;;  %v1509_v8 = vmul.f32 %v3577_v34, %v4343_v29  ;;  %v1676_v24 = vpop.xlane.xlu0 %1675 }
 0xb07   : > { %v3579_v10 = vpop.eup %3578 }
 0xb08   : > { %1096 = vadd.xlane.f32.xlu1 %v1095_v20  ;;  %v1510_v50 = vmul.f32 %v3579_v10, %v4347_v48  ;;  %v1396_v29 = vpop.xlane.xlu0 %1395  ;;  %v3581_v47 = vpop.eup %3580 }
 0xb09   : > { %v1507_v9 = vmul.f32 %v3581_v47, %v4345_v39 }
 0xb0a   : > { %v3415_v2 = vpack.i.bf16 %v1510_v50, %v1509_v8 }
 0xb0c   : > { %1102 = vadd.xlane.f32.xlu1 %v1101_v30  ;;  %v1402_v4 = vpop.xlane.xlu0 %1401  ;;  %v3473_v30 = vld [vmem:[#allocation2 + $0x8] sm:$0xff]  }
 0xb10   : > { %1108 = vadd.xlane.f32.xlu1 %v1107_v19  ;;  %v1682_v22 = vpop.xlane.xlu0 %1681 }
 0xb14   : > { %1114 = vadd.xlane.f32.xlu1 %v1113_v63 }
 0xb24   : > { %v1387_v35 = vpop.xlane.xlu1 %1386 }
 0xb25   : > { %3582 = vrcp.f32 %v1387_v35  ;;  %3416 = vrot.lane.b32.xlu1 %v3415_v2, %s3768_s28 }
 0xb26   : > { %3584 = vrcp.f32 %v1670_v14 }
 0xb28   : > { %v1673_v32 = vpop.xlane.xlu1 %1672 }
 0xb29   : > { %3586 = vrcp.f32 %v1673_v32 }
 0xb2a   : > { %3588 = vrcp.f32 %v1676_v24 }
 0xb2c   : > { %v1679_v48 = vpop.xlane.xlu1 %1678 }
 0xb2d   : > { %3590 = vrcp.f32 %v1679_v48 }
 0xb2e   : > { %3592 = vrcp.f32 %v1396_v29 }
 0xb2f   : > { %v3583_v12 = vpop.eup %3582 }
 0xb30   : > { %v1399_v26 = vpop.xlane.xlu1 %1398  ;;  %v1508_v27 = vmul.f32 %v3583_v12, %v4349_v38  ;;  %v3585_v37 = vpop.eup %3584 }
 0xb31   : > { %3594 = vrcp.f32 %v1399_v26  ;;  %v1793_v49 = vmul.f32 %v3585_v37, %v4425_v17 }
 0xb32   : > { %v3410_v40 = vpack.i.bf16 %v1508_v27, %v1507_v9  ;;  %3596 = vrcp.f32 %v1402_v4 }
 0xb33   : > { %v3587_v33 = vpop.eup %3586 }
 0xb34   : > { %3411 = vrot.lane.b32.xlu0 %v3410_v40, %s3768_s28  ;;  %v1405_v21 = vpop.xlane.xlu1 %1404  ;;  %v1794_v28 = vmul.f32 %v3587_v33, %v4429_v1  ;;  %v3589_v3 = vpop.eup %3588 }
 0xb35   : > { %3598 = vrcp.f32 %v1405_v21  ;;  %v1795_v38 = vmul.f32 %v3589_v3, %v4423_v23 }
 0xb36   : > { %v3420_v45 = vpack.i.bf16 %v1794_v28, %v1793_v49  ;;  %3600 = vrcp.f32 %v1682_v22 }
 0xb37   : > { %v3591_v25 = vpop.eup %3590 }
 0xb38   : > { %3421 = vrot.lane.b32.xlu1 %v3420_v45, %s3769_s21  ;;  %v1685_v39 = vpop.xlane.xlu1 %1684  ;;  %v1796_v42 = vmul.f32 %v3591_v25, %v4427_v18  ;;  %v3593_v11 = vpop.eup %3592 }
 0xb39   : > { %3602 = vrcp.f32 %v1685_v39  ;;  %v1511_v17 = vmul.f32 %v3593_v11, %v4353_v52 }
 0xb3a   : > { %v3425_v6 = vpack.i.bf16 %v1796_v42, %v1795_v38 }
 0xb3b   : > { %v3595_v53 = vpop.eup %3594 }
 0xb3c   : > { %3426 = vrot.lane.b32.xlu1 %v3425_v6, %s3769_s21  ;;  %v1512_v1 = vmul.f32 %v3595_v53, %v4357_v56  ;;  %v3597_v7 = vpop.eup %3596 }
 0xb3d   : > { %v1513_v16 = vmul.f32 %v3597_v7, %v4351_v51  ;;  %v3472_v51 = vld [vmem:[#allocation2] sm:$0xff]  }
 0xb3e   : > { %v3430_v15 = vpack.i.bf16 %v1512_v1, %v1511_v17  ;;  %3257 = vmatprep.subr.bf16.mxu1 %v3472_v51 }
 0xb3f   : > { %v3599_v55 = vpop.eup %3598  ;;  %3258 = vmatpush3.bf16.msra.mxu1 %v3472_v51 }
 0xb40   : > { %3431 = vrot.lane.b32.xlu0 %v3430_v15, %s3768_s28  ;;  %v1514_v23 = vmul.f32 %v3599_v55, %v4355_v54  ;;  %v3601_v18 = vpop.eup %3600  ;;  %3259 = vmatprep.subr.bf16.mxu1 %v3473_v30 }
 0xb41   : > { %v1797_v36 = vmul.f32 %v3601_v18, %v4433_v43 }
 0xb42   : > { %v3435_v13 = vpack.i.bf16 %v1514_v23, %v1513_v16 }
 0xb43   : > { %v3603_v46 = vpop.eup %3602  ;;  %3260 = vmatpush3.bf16.msra.mxu1 %v3473_v30 }
 0xb44   : > { %3436 = vrot.lane.b32.xlu1 %v3435_v13, %s3768_s28  ;;  %v1798_v52 = vmul.f32 %v3603_v46, %v4437_v5 }
 0xb46   : > { %v3450_v34 = vpack.i.bf16 %v1798_v52, %v1797_v36 }
 0xb4d   : > { %v1962_v56 = vpop.xlane.xlu0 %1961 }
 0xb51   : > { %v1956_v10 = vpop.xlane.xlu0 %1955 }
 0xb55   : > { %v1965_v20 = vpop.xlane.xlu1 %1964  ;;  %v1688_v50 = vpop.xlane.xlu0 %1687 }
 0xb56   : > { %3604 = vrcp.f32 %v1688_v50 }
 0xb59   : > { %v1959_v8 = vpop.xlane.xlu1 %1958 }
 0xb5d   : > { %v1691_v2 = vpop.xlane.xlu1 %1690  ;;  %v1968_v14 = vpop.xlane.xlu0 %1967 }
 0xb5e   : > { %3606 = vrcp.f32 %v1691_v2 }
 0xb5f   : > { %3608 = vrcp.f32 %v1962_v56 }
 0xb60   : > { %v3605_v54 = vpop.eup %3604  ;;  %3610 = vrcp.f32 %v1956_v10 }
 0xb61   : > { %v1799_v43 = vmul.f32 %v3605_v54, %v4431_v31  ;;  %3612 = vrcp.f32 %v1965_v20  ;;  %v1974_v35 = vpop.xlane.xlu0 %1973 }
 0xb62   : > { %3614 = vrcp.f32 %v1959_v8 }
 0xb63   : > { %3616 = vrcp.f32 %v1968_v14 }
 0xb64   : > { %3618 = vrcp.f32 %v1974_v35 }
 0xb65   : > { %v1094_v16 = vpop.xlane.xlu0 %1093 }
 0xb68   : > { %v3607_v19 = vpop.eup %3606 }
 0xb69   : > { %v1800_v5 = vmul.f32 %v3607_v19, %v4435_v0  ;;  %v3609_v32 = vpop.eup %3608  ;;  %v1100_v18 = vpop.xlane.xlu0 %1099 }
 0xb6a   : > { %v3611_v47 = vpop.eup %3610 }
 0xb6b   : > { %v3455_v63 = vpack.i.bf16 %v1800_v5, %v1799_v43  ;;  %v3613_v12 = vpop.eup %3612 }
 0xb6c   : > { %v3615_v26 = vpop.eup %3614 }
 0xb6d   : > { %v3617_v21 = vpop.eup %3616  ;;  %v1106_v46 = vpop.xlane.xlu0 %1105 }
 0xb6e   : > { %v3619_v28 = vpop.eup %3618 }
 0xb71   : > { %v1112_v52 = vpop.xlane.xlu0 %1111 }
 0xb8d   : > { %v1971_v24 = vpop.xlane.xlu1 %1970 }
 0xb91   : > { %v1977_v29 = vpop.xlane.xlu1 %1976 }
 0xb92   : > { %3620 = vrcp.f32 %v1977_v29 }
 0xb93   : > { %3622 = vrcp.f32 %v1971_v24 }
 0xb95   : > { %v1097_v7 = vpop.xlane.xlu1 %1096 }
 0xb99   : > { %v1103_v15 = vpop.xlane.xlu1 %1102 }
 0xb9a   : > { %3624 = vrcp.f32 %v1103_v15 }
 0xb9b   : > { %3626 = vrcp.f32 %v1094_v16 }
 0xb9c   : > { %v3621_v45 = vpop.eup %3620  ;;  %3628 = vrcp.f32 %v1100_v18 }
 0xb9d   : > { %v3623_v39 = vpop.eup %3622  ;;  %v1109_v55 = vpop.xlane.xlu1 %1108  ;;  %3630 = vrcp.f32 %v1097_v7 }
 0xb9e   : > { %3632 = vrcp.f32 %v1106_v46 }
 0xb9f   : > { %3634 = vrcp.f32 %v1112_v52 }
 0xba0   : > { %3636 = vrcp.f32 %v1109_v55 }
 0xba1   : > { %v1115_v23 = vpop.xlane.xlu1 %1114 }
 0xba2   : > { %3638 = vrcp.f32 %v1115_v23 }
 0xba4   : > { %v3625_v56 = vpop.eup %3624 }
 0xba5   : > { %v3417_v13 = vpop.permute.xlu1 %3416  ;;  %v3627_v20 = vpop.eup %3626  ;;  %v1224_v2 = vmul.f32 %v3625_v56, %v4263_v59 }
 0xba6   : > { %v3412_v10 = vpop.permute.xlu0 %3411  ;;  %v3629_v8 = vpop.eup %3628  ;;  %v3419_v51 = vunpack.i.h.bf16 %v3417_v13  ;;  %v3418_v30 = vunpack.i.l.bf16 %v3417_v13  ;;  %v1221_v35 = vmul.f32 %v3627_v20, %v4261_v58 }
 0xba7   : > { %v3631_v50 = vpop.eup %3630  ;;  %v3414_v19 = vunpack.i.h.bf16 %v3412_v10  ;;  %v3413_v43 = vunpack.i.l.bf16 %v3412_v10 }
 0xba8   : > { %v1222_v29 = vmul.f32 %v3631_v50, %v4265_v44 }
 0xbaa   : > { %v3422_v36 = vpop.permute.xlu1 %3421 }
 0xbb2   : > { %v3432_v5 = vpop.permute.xlu0 %3431 }
 0xbcb   : > { %v3251_v48 = vpop.f32.mrb[32].mxu1 }
 0xbcc   : > { %v2040_v4 = vpop.f32.mrb[33].mxu1  ;;  %v2081_v0 = vmul.f32 %v3609_v32, %v3251_v48  ;;  %v3424_v32 = vunpack.i.h.bf16 %v3422_v36  ;;  %v3423_v48 = vunpack.i.l.bf16 %v3422_v36 }
 0xbcd   : > { %v3252_v31 = vpop.f32.mrb[34].mxu1  ;;  %v2079_v37 = vmul.f32 %v3611_v47, %v2040_v4  ;;  %v2186_v47 = vsel %vm954_vm2, %v1224_v2, %v3419_v51 }
 0xbce   : > { %v2082_v9 = vmul.f32 %v3613_v12, %v3252_v31  ;;  %v2043_v27 = vpop.f32.mrb[35].mxu1  ;;  %v2183_v12 = vsel %vm954_vm2, %v1221_v35, %v3413_v43  ;;  %v2184_v31 = vsel %vm954_vm2, %v1222_v29, %v3414_v19  ;;  %v3672_v35 = vld [vmem:[%s3905_s19 + $0x10] sm:$0xff] }
 0xbcf   : > { %v2080_v40 = vmul.f32 %v3615_v26, %v2043_v27 }
 0xbd0   : > { %v3440_v33 = vpack.i.bf16 %v2082_v9, %v2081_v0 }
 0xbd1   : > { %v3445_v22 = vpack.i.bf16 %v2080_v40, %v2079_v37  ;;  %v3633_v37 = vpop.eup %3632  ;;  %v2193_v40 = vsel %vm2191_vm3, %v2184_v31, %v3424_v32  ;;  %v3673_v32 = vld [vmem:[%s3905_s19] sm:$0xff] }
 0xbd2   : > { %3441 = vrot.lane.b32.xlu1 %v3440_v33, %s3770_s22  ;;  %v2192_v33 = vsel %vm2191_vm3, %v2183_v12, %v3423_v48  ;;  %v1225_v7 = vmul.f32 %v3633_v37, %v4269_v41 }
 0xbd3   : > { %3446 = vrot.lane.b32.xlu0 %v3445_v22, %s3770_s22 }
 0xbd5   : > { %v3255_v49 = vpop.f32.mrb[36].mxu1 }
 0xbd6   : > { %v2056_v3 = vpop.f32.mrb[37].mxu1  ;;  %3456 = vrot.lane.b32.xlu1 %v3455_v63, %s3769_s21  ;;  %v2085_v38 = vmul.f32 %v3619_v28, %v3255_v49  ;;  %v1223_v63 = vmul.f32 %v3629_v8, %v4259_v57  ;;  %v3635_v49 = vpop.eup %3634 }
 0xbd7   : > { %v3256_v25 = vpop.f32.mrb[38].mxu1  ;;  %3451 = vrot.lane.b32.xlu0 %v3450_v34, %s3769_s21  ;;  %v2083_v6 = vmul.f32 %v3617_v21, %v2056_v3  ;;  %v3427_v34 = vpop.permute.xlu1 %3426  ;;  %v1227_v23 = vmul.f32 %v3635_v49, %v4267_v60 }
 0xbd8   : > { %v2086_v42 = vmul.f32 %v3621_v45, %v3256_v25  ;;  %v2059_v11 = vpop.f32.mrb[39].mxu1  ;;  %v3429_v14 = vunpack.i.h.bf16 %v3427_v34  ;;  %v3428_v24 = vunpack.i.l.bf16 %v3427_v34  ;;  %v2185_v59 = vsel %vm954_vm2, %v1223_v63, %v3418_v30  ;;  %v3637_v25 = vpop.eup %3636 }
 0xbd9   : > { %v2084_v53 = vmul.f32 %v3623_v39, %v2059_v11  ;;  %v3434_v11 = vunpack.i.h.bf16 %v3432_v5  ;;  %v1226_v15 = vmul.f32 %v3637_v25, %v4273_v62 }
 0xbda   : > { %v3465_v17 = vpack.i.bf16 %v2086_v42, %v2085_v38  ;;  %v2194_v58 = vsel %vm2191_vm3, %v2185_v59, %v3428_v24  ;;  %v2195_v44 = vsel %vm2191_vm3, %v2186_v47, %v3429_v14  ;;  %v3639_v42 = vpop.eup %3638 }
 0xbdb   : > { %v3460_v1 = vpack.i.bf16 %v2084_v53, %v2083_v6  ;;  %v3437_v54 = vpop.permute.xlu1 %3436  ;;  %v3433_v6 = vunpack.i.l.bf16 %v3432_v5  ;;  %v1228_v18 = vmul.f32 %v3639_v42, %v4271_v61  ;;  %v2188_v52 = vsel %vm954_vm2, %v1226_v15, %v3434_v11  ;;  %v3679_v42 = vld [vmem:[%s3905_s19 + $0x28] sm:$0xff] }
 0xbdc   : > { %3466 = vrot.lane.b32.xlu1 %v3465_v17, %s3770_s22  ;;  %v3439_v17 = vunpack.i.h.bf16 %v3437_v54 }
 0xbdd   : > { %3461 = vrot.lane.b32.xlu0 %v3460_v1, %s3770_s22  ;;  %v3438_v1 = vunpack.i.l.bf16 %v3437_v54  ;;  %v2187_v36 = vsel %vm954_vm2, %v1225_v7, %v3433_v6 }
 0xbde   : > { %v2190_v56 = vsel %vm954_vm2, %v1228_v18, %v3439_v17 }
 0xbdf   : > { %v2189_v41 = vsel %vm954_vm2, %v1227_v23, %v3438_v1 }
 0xc44   : > { %v3442_v4 = vpop.permute.xlu1 %3441 }
 0xc45   : > { %v3444_v57 = vunpack.i.h.bf16 %v3442_v4  ;;  %v3443_v26 = vunpack.i.l.bf16 %v3442_v4  ;;  %v3447_v0 = vpop.permute.xlu0 %3446  ;;  %v3674_v4 = vld [vmem:[%s3905_s19 + $0x8] sm:$0xff] }
 0xc46   : > { %v3449_v9 = vunpack.i.h.bf16 %v3447_v0  ;;  %v3448_v27 = vunpack.i.l.bf16 %v3447_v0 }
 0xc47   : > { %v2203_v22 = vsel %vm2200_vm4, %v2194_v58, %v3443_v26  ;;  %v2204_v21 = vsel %vm2200_vm4, %v2195_v44, %v3444_v57  ;;  %v3675_v57 = vld [vmem:[%s3905_s19 + $0x18] sm:$0xff] }
 0xc48   : > { %v2210_v28 = vpack.c.bf16 %v2204_v21, %v2203_v22  ;;  %v2201_v3 = vsel %vm2200_vm4, %v2192_v33, %v3448_v27  ;;  %v2202_v45 = vsel %vm2200_vm4, %v2193_v40, %v3449_v9  ;;  %v3457_v38 = vpop.permute.xlu1 %3456  ;;  %v3676_v22 = vld [vmem:[%s3905_s19 + $0x20] sm:$0xff] }
 0xc49   : > { %v2209_v39 = vpack.c.bf16 %v2202_v45, %v2201_v3  ;;  %v3452_v53 = vpop.permute.xlu0 %3451  ;;  %v3459_v55 = vunpack.i.h.bf16 %v3457_v38  ;;  %v3458_v16 = vunpack.i.l.bf16 %v3457_v38  ;;  %v3677_v45 = vld [vmem:[%s3905_s19 + $0x30] sm:$0xff] }
 0xc4a   : > { %v3454_v13 = vunpack.i.h.bf16 %v3452_v53  ;;  %v3453_v46 = vunpack.i.l.bf16 %v3452_v53 }
 0xc4b   : > { %3261 = vmatprep.mubr.msk.bf16.mxu1 %vm396_vm0, %v2209_v39  ;;  %v2198_v8 = vsel %vm2191_vm3, %v2189_v41, %v3458_v16  ;;  %v2199_v60 = vsel %vm2191_vm3, %v2190_v56, %v3459_v55  ;;  %v3678_v39 = vld [vmem:[%s3905_s19 + $0x38] sm:$0xff]  ;;  %v3474_v56 = vld [vmem:[#allocation4] sm:$0xff]  }
 0xc4c   : > { %3262 = vmatmul.mubr.msk.bf16.vlgmr.msra.gmra.mrb[40].mxu1 %vm396_vm0, %v2210_v28  ;;  %v2196_v2 = vsel %vm2191_vm3, %v2187_v36, %v3453_v46  ;;  %v2197_v51 = vsel %vm2191_vm3, %v2188_v52, %v3454_v13  ;;  %3269 = vmatprep.subr.bf16.mxu0 %v3474_v56 }
 0xc4d   : > { %3270 = vmatpush3.bf16.msra.mxu0 %v3474_v56  ;;  %v3476_v56 = vld [vmem:[%s4786_s7] sm:$0xff]  }
 0xc4e   : > { %v3467_v34 = vpop.permute.xlu1 %3466  ;;  %3281 = vmatprep.subr.bf16.mxu1 %v3476_v56 }
 0xc4f   : > { %v3469_v62 = vunpack.i.h.bf16 %v3467_v34  ;;  %v3468_v10 = vunpack.i.l.bf16 %v3467_v34  ;;  %v3462_v20 = vpop.permute.xlu0 %3461  ;;  %3282 = vmatpush3.bf16.msra.mxu1 %v3476_v56 }
 0xc50   : > { %v3464_v61 = vunpack.i.h.bf16 %v3462_v20  ;;  %v3463_v50 = vunpack.i.l.bf16 %v3462_v20 }
 0xc51   : > { %v2207_v30 = vsel %vm2200_vm4, %v2198_v8, %v3468_v10  ;;  %v2208_v54 = vsel %vm2200_vm4, %v2199_v60, %v3469_v62 }
 0xc52   : > { %v2212_v19 = vpack.c.bf16 %v2208_v54, %v2207_v30  ;;  %v2205_v43 = vsel %vm2200_vm4, %v2196_v2, %v3463_v50  ;;  %v2206_v5 = vsel %vm2200_vm4, %v2197_v51, %v3464_v61 }
 0xc53   : > { %v2211_v63 = vpack.c.bf16 %v2206_v5, %v2205_v43 }
 0xc55   : > { %3265 = vmatprep.mubr.msk.bf16.mxu1 %vm396_vm0, %v2211_v63  ;;  %v3680_v63 = vld [vmem:[%s4003_s20] ss:$0 sm:$0xff] }
 0xc56   : > { %3266 = vmatmul.mubr.msk.bf16.gmra.mrb[44].mxu1 %vm396_vm0, %v2212_v19  ;;  %v3475_v19 = vld [vmem:[#allocation4 + $0x8] sm:$0xff]  }
 0xc57   : > { %3271 = vmatprep.subr.bf16.mxu0 %v3475_v19 }
 0xc58   : > { %3272 = vmatpush3.bf16.msra.mxu0 %v3475_v19 }
 0xd1f   : > { %v3263_v14 = vpop.f32.mrb[40].mxu1 }
 0xd20   : > { %v2275_v24 = vpop.f32.mrb[41].mxu1  ;;  %v4600_v29 = vadd.f32 %v3672_v35, %v3263_v14 }
 0xd21   : > { %v4603_v48 = vadd.f32 %v3673_v32, %v2275_v24  ;;  %v3264_v47 = vpop.f32.mrb[42].mxu1 }
 0xd22   : > { %v2278_v59 = vpop.f32.mrb[43].mxu1  ;;  %v4611_v26 = vadd.f32 %v3675_v57, %v3264_v47  ;;  %v2316_v44 = vmul.f32 %v4600_v29, %v4600_v29 }
 0xd23   : > { %v4606_v12 = vadd.f32 %v3674_v4, %v2278_v59  ;;  %v2314_v31 = vmul.f32 %v4603_v48, %v4603_v48 }
 0xd24   : > { %v2317_v27 = vmul.f32 %v4611_v26, %v4611_v26  ;;  %v2328_v40 = vsel %vm396_vm0, %v2316_v44, 0.0 }
 0xd25   : > { %v2322_v0 = vsel %vm396_vm0, %v2314_v31, 0.0  ;;  %v2315_v58 = vmul.f32 %v4606_v12, %v4606_v12 }
 0xd26   : > { %2323 = vadd.xlane.f32.xlu0 %v2322_v0  ;;  %v2331_v3 = vsel %vm396_vm0, %v2317_v27, 0.0 }
 0xd27   : > { %v2325_v9 = vsel %vm396_vm0, %v2315_v58, 0.0 }
 0xd28   : > { %2326 = vadd.xlane.f32.xlu1 %v2325_v9 }
 0xd29   : > { %v3267_v37 = vpop.f32.mrb[44].mxu1 }
 0xd2a   : > { %2329 = vadd.xlane.f32.xlu0 %v2328_v40  ;;  %v2291_v33 = vpop.f32.mrb[45].mxu1  ;;  %v4627_v25 = vadd.f32 %v3677_v45, %v3267_v37 }
 0xd2b   : > { %v4623_v21 = vadd.f32 %v3676_v22, %v2291_v33  ;;  %v3268_v49 = vpop.f32.mrb[46].mxu1 }
 0xd2c   : > { %v2294_v28 = vpop.f32.mrb[47].mxu1  ;;  %v4630_v38 = vadd.f32 %v3678_v39, %v3268_v49  ;;  %v2320_v7 = vmul.f32 %v4627_v25, %v4627_v25 }
 0xd2d   : > { %v4633_v11 = vadd.f32 %v3679_v42, %v2294_v28  ;;  %v2318_v6 = vmul.f32 %v4623_v21, %v4623_v21 }
 0xd2e   : > { %2332 = vadd.xlane.f32.xlu0 %v2331_v3  ;;  %v2321_v15 = vmul.f32 %v4630_v38, %v4630_v38  ;;  %v2340_v55 = vsel %vm396_vm0, %v2320_v7, 0.0 }
 0xd2f   : > { %v2319_v53 = vmul.f32 %v4633_v11, %v4633_v11  ;;  %v2334_v17 = vsel %vm396_vm0, %v2318_v6, 0.0 }
 0xd30   : > { %v2343_v16 = vsel %vm396_vm0, %v2321_v15, 0.0 }
 0xd31   : > { %v2337_v1 = vsel %vm396_vm0, %v2319_v53, 0.0 }
 0xd32   : > { %2335 = vadd.xlane.f32.xlu0 %v2334_v17  ;;  %2338 = vadd.xlane.f32.xlu1 %v2337_v1 }
 0xd36   : > { %2341 = vadd.xlane.f32.xlu0 %v2340_v55  ;;  %2344 = vadd.xlane.f32.xlu1 %v2343_v16 }
 0xdb3   : > { %v2324_v23 = vpop.xlane.xlu0 %2323 }
 0xdb4   : > { %v2346_v18 = vmul.f32 0.03125, %v2324_v23 }
 0xdb5   : > { %v2327_v13 = vpop.xlane.xlu1 %2326 }
 0xdb6   : > { %v2354_v46 = vadd.f32 1e-06, %v2346_v18  ;;  %v2347_v36 = vmul.f32 0.03125, %v2327_v13 }
 0xdb7   : > { %v2330_v52 = vpop.xlane.xlu0 %2329 }
 0xdb8   : > { %3640 = vrsqrt.f32 %v2354_v46  ;;  %v2348_v34 = vmul.f32 0.03125, %v2330_v52  ;;  %v2355_v41 = vadd.f32 1e-06, %v2347_v36 }
 0xdba   : > { %v2356_v62 = vadd.f32 1e-06, %v2348_v34 }
 0xdbb   : > { %v2333_v10 = vpop.xlane.xlu0 %2332 }
 0xdbc   : > { %3642 = vrsqrt.f32 %v2356_v62  ;;  %v2349_v20 = vmul.f32 0.03125, %v2333_v10 }
 0xdbd   : > { %3644 = vrsqrt.f32 %v2355_v41  ;;  %v3477_v41 = vld [vmem:[%s4786_s7 + $0x8] sm:$0xff]  }
 0xdbe   : > { %v2357_v8 = vadd.f32 1e-06, %v2349_v20  ;;  %3283 = vmatprep.subr.bf16.mxu1 %v3477_v41 }
 0xdbf   : > { %v2336_v60 = vpop.xlane.xlu0 %2335  ;;  %v2339_v61 = vpop.xlane.xlu1 %2338  ;;  %3284 = vmatpush3.bf16.msra.mxu1 %v3477_v41 }
 0xdc0   : > { %v2350_v50 = vmul.f32 0.03125, %v2336_v60  ;;  %v2351_v2 = vmul.f32 0.03125, %v2339_v61  ;;  %3646 = vrsqrt.f32 %v2357_v8 }
 0xdc2   : > { %v3641_v51 = vpop.eup %3640  ;;  %v2358_v30 = vadd.f32 1e-06, %v2350_v50  ;;  %v2359_v54 = vadd.f32 1e-06, %v2351_v2 }
 0xdc3   : > { %v2342_v43 = vpop.xlane.xlu0 %2341  ;;  %v2345_v5 = vpop.xlane.xlu1 %2344  ;;  %v2370_v14 = vmul.f32 %v3680_v63, %v3641_v51 }
 0xdc4   : > { %3648 = vrsqrt.f32 %v2358_v30  ;;  %v2352_v24 = vmul.f32 0.03125, %v2342_v43  ;;  %v2353_v35 = vmul.f32 0.03125, %v2345_v5 }
 0xdc5   : > { %2386 = vrot.lane.b32.xlu0 %v2370_v14, %s3758_s10  ;;  %3650 = vrsqrt.f32 %v2359_v54 }
 0xdc6   : > { %v3643_v32 = vpop.eup %3642  ;;  %v2360_v47 = vadd.f32 1e-06, %v2352_v24  ;;  %v2361_v59 = vadd.f32 1e-06, %v2353_v35 }
 0xdc7   : > { %v2372_v4 = vmul.f32 %v3680_v63, %v3643_v32  ;;  %v3645_v31 = vpop.eup %3644 }
 0xdc8   : > { %3652 = vrsqrt.f32 %v2360_v47  ;;  %v2371_v57 = vmul.f32 %v3680_v63, %v3645_v31 }
 0xdc9   : > { %2390 = vrot.lane.b32.xlu1 %v2372_v4, %s3758_s10  ;;  %3654 = vrsqrt.f32 %v2361_v59 }
 0xdca   : > { %v3647_v0 = vpop.eup %3646 }
 0xdcb   : > { %v2373_v9 = vmul.f32 %v3680_v63, %v3647_v0 }
 0xdcd   : > { %2388 = vrot.lane.b32.xlu1 %v2371_v57, %s3758_s10 }
 0xdce   : > { %v3649_v58 = vpop.eup %3648 }
 0xdcf   : > { %v2374_v44 = vmul.f32 %v3680_v63, %v3649_v58  ;;  %v3651_v27 = vpop.eup %3650 }
 0xdd0   : > { %v2375_v33 = vmul.f32 %v3680_v63, %v3651_v27 }
 0xdd1   : > { %2394 = vrot.lane.b32.xlu0 %v2374_v44, %s3758_s10  ;;  %2392 = vrot.lane.b32.xlu1 %v2373_v9, %s3758_s10 }
 0xdd2   : > { %v3653_v37 = vpop.eup %3652 }
 0xdd3   : > { %v2376_v40 = vmul.f32 %v3680_v63, %v3653_v37  ;;  %v3655_v22 = vpop.eup %3654 }
 0xdd4   : > { %v2377_v49 = vmul.f32 %v3680_v63, %v3655_v22 }
 0xdd5   : > { %2398 = vrot.lane.b32.xlu0 %v2376_v40, %s3758_s10  ;;  %2396 = vrot.lane.b32.xlu1 %v2375_v33, %s3758_s10 }
 0xdd9   : > { %2400 = vrot.lane.b32.xlu1 %v2377_v49, %s3758_s10 }
 0xe37   : > { %v2387_v3 = vpop.permute.xlu0 %2386 }
 0xe38   : > { %v2410_v39 = vmul.f32 %v2387_v3, %v4603_v48 }
 0xe3b   : > { %v2391_v28 = vpop.permute.xlu1 %2390 }
 0xe3c   : > { %v2412_v1 = vmul.f32 %v2391_v28, %v4600_v29 }
 0xe3f   : > { %v2389_v45 = vpop.permute.xlu1 %2388 }
 0xe40   : > { %v2411_v42 = vmul.f32 %v2389_v45, %v4606_v12 }
 0xe42   : > { %v2418_v6 = vpack.c.bf16 %v2411_v42, %v2410_v39 }
 0xe43   : > { %v2395_v53 = vpop.permute.xlu0 %2394  ;;  %v2393_v17 = vpop.permute.xlu1 %2392 }
 0xe44   : > { %v2413_v7 = vmul.f32 %v2393_v17, %v4611_v26  ;;  %3273 = vmatprep.mubr.msk.bf16.mxu0 %vm396_vm0, %v2418_v6  ;;  %v2414_v16 = vmul.f32 %v2395_v53, %v4623_v21 }
 0xe46   : > { %v2419_v15 = vpack.c.bf16 %v2413_v7, %v2412_v1 }
 0xe47   : > { %v2397_v55 = vpop.permute.xlu1 %2396  ;;  %v2399_v18 = vpop.permute.xlu0 %2398 }
 0xe48   : > { %v2415_v23 = vmul.f32 %v2397_v55, %v4633_v11  ;;  %3274 = vmatmul.mubr.msk.bf16.vlgmr.msra.gmra.mrb[48].mxu0 %vm396_vm0, %v2419_v15  ;;  %v2416_v36 = vmul.f32 %v2399_v18, %v4627_v25  ;;  %v3478_v15 = vld [vmem:[%s4786_s7 + $0x10] sm:$0xff]  }
 0xe49   : > { %3285 = vmatprep.subr.bf16.mxu1 %v3478_v15 }
 0xe4a   : > { %v2420_v13 = vpack.c.bf16 %v2415_v23, %v2414_v16  ;;  %3286 = vmatpush3.bf16.msra.mxu1 %v3478_v15 }
 0xe4b   : > { %v2401_v46 = vpop.permute.xlu1 %2400 }
 0xe4c   : > { %v2417_v52 = vmul.f32 %v2401_v46, %v4630_v38  ;;  %3277 = vmatprep.mubr.msk.bf16.mxu0 %vm396_vm0, %v2420_v13  ;;  %v3479_v46 = vld [vmem:[%s4786_s7 + $0x18] sm:$0xff]  }
 0xe4d   : > { %3287 = vmatprep.subr.bf16.mxu1 %v3479_v46 }
 0xe4e   : > { %v2421_v34 = vpack.c.bf16 %v2417_v52, %v2416_v36  ;;  %3288 = vmatpush3.bf16.msra.mxu1 %v3479_v46 }
 0xe50   : > { %3278 = vmatmul.mubr.msk.bf16.gmra.mrb[52].mxu0 %vm396_vm0, %v2421_v34 }
 0xf1b   : > { %v4674_v62 = vpop.f32.mrb[48].mxu0 }
 0xf1c   : > { %v2517_v10 = vmul.f32 %v4674_v62, %v4674_v62  ;;  %v4678_v20 = vpop.f32.mrb[49].mxu0 }
 0xf1d   : > { %v2515_v8 = vmul.f32 %v4678_v20, %v4678_v20  ;;  %v4682_v60 = vpop.f32.mrb[50].mxu0 }
 0xf1e   : > { %v2525_v61 = vmul.f32 %v4674_v62, %v2517_v10  ;;  %v2518_v50 = vmul.f32 %v4682_v60, %v4682_v60  ;;  %v4687_v2 = vpop.f32.mrb[51].mxu0 }
 0xf1f   : > { %v2523_v51 = vmul.f32 %v2515_v8, %v4678_v20  ;;  %v2516_v30 = vmul.f32 %v4687_v2, %v4687_v2 }
 0xf20   : > { %v2533_v54 = vmul.f32 0.044715, %v2525_v61  ;;  %v2526_v19 = vmul.f32 %v4682_v60, %v2518_v50 }
 0xf21   : > { %v2531_v43 = vmul.f32 0.044715, %v2523_v51  ;;  %v2524_v5 = vmul.f32 %v2516_v30, %v4687_v2 }
 0xf22   : > { %v2541_v63 = vadd.f32 %v4674_v62, %v2533_v54  ;;  %v2534_v14 = vmul.f32 0.044715, %v2526_v19 }
 0xf23   : > { %v2539_v24 = vadd.f32 %v2531_v43, %v4678_v20  ;;  %v2532_v35 = vmul.f32 0.044715, %v2524_v5  ;;  %v4696_v32 = vpop.f32.mrb[52].mxu0 }
 0xf24   : > { %v2549_v47 = vmul.f32 0.7978846, %v2541_v63  ;;  %v2542_v59 = vadd.f32 %v4682_v60, %v2534_v14  ;;  %v2521_v4 = vmul.f32 %v4696_v32, %v4696_v32  ;;  %v4701_v31 = vpop.f32.mrb[53].mxu0 }
 0xf25   : > { %v2547_v57 = vmul.f32 0.7978846, %v2539_v24  ;;  %v2540_v0 = vadd.f32 %v2532_v35, %v4687_v2  ;;  %v2519_v58 = vmul.f32 %v4701_v31, %v4701_v31  ;;  %v4706_v44 = vpop.f32.mrb[54].mxu0 }
 0xf26   : > { %3656 = vtanh.f32 %v2549_v47  ;;  %v2550_v9 = vmul.f32 0.7978846, %v2542_v59  ;;  %v2529_v27 = vmul.f32 %v4696_v32, %v2521_v4  ;;  %v2522_v37 = vmul.f32 %v4706_v44, %v4706_v44  ;;  %v4711_v40 = vpop.f32.mrb[55].mxu0 }
 0xf27   : > { %3658 = vtanh.f32 %v2547_v57  ;;  %v2548_v33 = vmul.f32 0.7978846, %v2540_v0  ;;  %v2527_v22 = vmul.f32 %v2519_v58, %v4701_v31  ;;  %v2520_v49 = vmul.f32 %v4711_v40, %v4711_v40 }
 0xf28   : > { %3660 = vtanh.f32 %v2550_v9  ;;  %v2537_v28 = vmul.f32 0.044715, %v2529_v27  ;;  %v2530_v3 = vmul.f32 %v4706_v44, %v2522_v37 }
 0xf29   : > { %3662 = vtanh.f32 %v2548_v33  ;;  %v2535_v45 = vmul.f32 0.044715, %v2527_v22  ;;  %v2528_v39 = vmul.f32 %v2520_v49, %v4711_v40 }
 0xf2a   : > { %v2545_v42 = vadd.f32 %v4696_v32, %v2537_v28  ;;  %v2538_v6 = vmul.f32 0.044715, %v2530_v3 }
 0xf2b   : > { %v2543_v53 = vadd.f32 %v2535_v45, %v4701_v31  ;;  %v2536_v17 = vmul.f32 0.044715, %v2528_v39 }
 0xf2c   : > { %v2553_v1 = vmul.f32 0.7978846, %v2545_v42  ;;  %v2546_v7 = vadd.f32 %v4706_v44, %v2538_v6 }
 0xf2d   : > { %v2551_v55 = vmul.f32 0.7978846, %v2543_v53  ;;  %v2544_v16 = vadd.f32 %v2536_v17, %v4711_v40 }
 0xf2e   : > { %3664 = vtanh.f32 %v2553_v1  ;;  %v2554_v23 = vmul.f32 0.7978846, %v2546_v7 }
 0xf2f   : > { %3666 = vtanh.f32 %v2551_v55  ;;  %v2552_v18 = vmul.f32 0.7978846, %v2544_v16 }
 0xf30   : > { %v3657_v13 = vpop.eup %3656  ;;  %3668 = vtanh.f32 %v2554_v23 }
 0xf31   : > { %v3659_v36 = vpop.eup %3658  ;;  %3670 = vtanh.f32 %v2552_v18  ;;  %v2565_v56 = vadd.f32 1.0, %v3657_v13 }
 0xf32   : > { %v3661_v52 = vpop.eup %3660  ;;  %v2563_v34 = vadd.f32 1.0, %v3659_v36 }
 0xf33   : > { %v3663_v41 = vpop.eup %3662  ;;  %v2566_v61 = vadd.f32 1.0, %v3661_v52  ;;  %v2573_v30 = vmul.f32 0.5, %v2565_v56 }
 0xf34   : > { %v2571_v10 = vmul.f32 0.5, %v2563_v34  ;;  %v2564_v8 = vadd.f32 1.0, %v3663_v41 }
 0xf35   : > { %v2574_v43 = vmul.f32 0.5, %v2566_v61  ;;  %v2581_v14 = vmul.f32 %v4674_v62, %v2573_v30 }
 0xf36   : > { %v2579_v50 = vmul.f32 %v2571_v10, %v4678_v20  ;;  %v2572_v51 = vmul.f32 0.5, %v2564_v8 }
 0xf37   : > { %v2582_v4 = vmul.f32 %v4682_v60, %v2574_v43 }
 0xf38   : > { %v3665_v54 = vpop.eup %3664  ;;  %2595 = vrot.lane.b32.xlu0 %v2579_v50, %s3757_s24  ;;  %v2580_v19 = vmul.f32 %v2572_v51, %v4687_v2 }
 0xf39   : > { %v3667_v5 = vpop.eup %3666  ;;  %v2569_v35 = vadd.f32 1.0, %v3665_v54 }
 0xf3a   : > { %v3669_v63 = vpop.eup %3668  ;;  %2597 = vrot.lane.b32.xlu1 %v2580_v19, %s3757_s24  ;;  %v2567_v24 = vadd.f32 1.0, %v3667_v5 }
 0xf3b   : > { %v3671_v47 = vpop.eup %3670  ;;  %v2570_v0 = vadd.f32 1.0, %v3669_v63  ;;  %v2577_v27 = vmul.f32 0.5, %v2569_v35 }
 0xf3c   : > { %v2568_v59 = vadd.f32 1.0, %v3671_v47  ;;  %2599 = vrot.lane.b32.xlu0 %v2581_v14, %s3757_s24  ;;  %v2575_v57 = vmul.f32 0.5, %v2567_v24 }
 0xf3d   : > { %v2578_v33 = vmul.f32 0.5, %v2570_v0  ;;  %v2585_v22 = vmul.f32 %v4696_v32, %v2577_v27 }
 0xf3e   : > { %v2576_v58 = vmul.f32 0.5, %v2568_v59  ;;  %2601 = vrot.lane.b32.xlu1 %v2582_v4, %s3757_s24  ;;  %v2583_v9 = vmul.f32 %v2575_v57, %v4701_v31 }
 0xf3f   : > { %v2586_v49 = vmul.f32 %v4706_v44, %v2578_v33 }
 0xf40   : > { %v2584_v37 = vmul.f32 %v2576_v58, %v4711_v40  ;;  %2603 = vrot.lane.b32.xlu0 %v2583_v9, %s3757_s24 }
 0xf42   : > { %2605 = vrot.lane.b32.xlu1 %v2584_v37, %s3757_s24 }
 0xf44   : > { %2607 = vrot.lane.b32.xlu0 %v2585_v22, %s3757_s24 }
 0xf46   : > { %2609 = vrot.lane.b32.xlu1 %v2586_v49, %s3757_s24 }
 0xfaa   : > { %v2596_v28 = vpop.permute.xlu0 %2595 }
 0xfab   : > { %v2619_v45 = vmul.f32 %v2596_v28, %v4678_v20 }
 0xfac   : > { %v2598_v3 = vpop.permute.xlu1 %2597 }
 0xfad   : > { %v2620_v39 = vmul.f32 %v2598_v3, %v4687_v2 }
 0xfae   : > { %v2600_v42 = vpop.permute.xlu0 %2599 }
 0xfaf   : > { %v2627_v6 = vpack.c.bf16 %v2620_v39, %v2619_v45  ;;  %v2621_v17 = vmul.f32 %v4674_v62, %v2600_v42 }
 0xfb0   : > { %v2602_v53 = vpop.permute.xlu1 %2601 }
 0xfb1   : > { %v2622_v1 = vmul.f32 %v4682_v60, %v2602_v53  ;;  %3289 = vmatprep.mubr.msk.bf16.mxu1 %vm571_vm1, %v2627_v6 }
 0xfb2   : > { %v2604_v7 = vpop.permute.xlu0 %2603 }
 0xfb3   : > { %v2628_v15 = vpack.c.bf16 %v2622_v1, %v2621_v17  ;;  %v2623_v16 = vmul.f32 %v2604_v7, %v4701_v31 }
 0xfb4   : > { %v2606_v55 = vpop.permute.xlu1 %2605 }
 0xfb5   : > { %v2624_v23 = vmul.f32 %v2606_v55, %v4711_v40  ;;  %3290 = vmatmul.mubr.msk.bf16.vlgmr.msra.gmra.mrb[48].mxu1 %vm571_vm1, %v2628_v15 }
 0xfb6   : > { %v2608_v20 = vpop.permute.xlu0 %2607 }
 0xfb7   : > { %v2629_v2 = vpack.c.bf16 %v2624_v23, %v2623_v16  ;;  %v2625_v13 = vmul.f32 %v4696_v32, %v2608_v20 }
 0xfb8   : > { %v2610_v18 = vpop.permute.xlu1 %2609 }
 0xfb9   : > { %v2626_v62 = vmul.f32 %v4706_v44, %v2610_v18  ;;  %3293 = vmatprep.mubr.msk.bf16.mxu1 %vm571_vm1, %v2629_v2 }
 0xfbb   : > { %v2630_v60 = vpack.c.bf16 %v2626_v62, %v2625_v13 }
 0xfbd   : > { %3294 = vmatmul.mubr.msk.bf16.gmra.mrb[52].mxu1 %vm571_vm1, %v2630_v60 }
0x1088   : > { %v3291_v31 = vpop.f32.mrb[48].mxu1 }
0x1089   : > { %v2742_v40 = vadd.f32 %v3291_v31, %v4600_v29  ;;  %v2709_v46 = vpop.f32.mrb[49].mxu1 }
0x108a   : > { %v2740_v36 = vadd.f32 %v2709_v46, %v4603_v48  ;;  %v3292_v52 = vpop.f32.mrb[50].mxu1 }
0x108b   : > { %2750 = vst.msk [vmem:[%s359_s15 + $0x10] sm:$0xff] %vm396_vm0, %v2742_v40  ;;  %v2743_v32 = vadd.f32 %v3292_v52, %v4611_v26  ;;  %v2712_v44 = vpop.f32.mrb[51].mxu1 }
0x108c   : > { %2748 = vst.msk [vmem:[%s359_s15] sm:$0xff] %vm396_vm0, %v2740_v36  ;;  %v2741_v34 = vadd.f32 %v2712_v44, %v4606_v12 }
0x108d   : > { %2751 = vst.msk [vmem:[%s359_s15 + $0x18] sm:$0xff] %vm396_vm0, %v2743_v32 }
0x108e   : > { %2749 = vst.msk [vmem:[%s359_s15 + $0x8] sm:$0xff] %vm396_vm0, %v2741_v34 }
0x1090   : > { %v3295_v56 = vpop.f32.mrb[52].mxu1 }
0x1091   : > { %v2746_v29 = vadd.f32 %v3295_v56, %v4627_v25  ;;  %v2725_v41 = vpop.f32.mrb[53].mxu1 }
0x1092   : > { %v2744_v48 = vadd.f32 %v2725_v41, %v4623_v21  ;;  %v3296_v10 = vpop.f32.mrb[54].mxu1 }
0x1093   : > { %2754 = vst.msk [vmem:[%s359_s15 + $0x30] sm:$0xff] %vm396_vm0, %v2746_v29  ;;  %v2747_v26 = vadd.f32 %v3296_v10, %v4630_v38  ;;  %v2728_v8 = vpop.f32.mrb[55].mxu1 }
0x1094   : > { %2752 = vst.msk [vmem:[%s359_s15 + $0x20] sm:$0xff] %vm396_vm0, %v2744_v48  ;;  %v2745_v12 = vadd.f32 %v2728_v8, %v4633_v11 }
0x1095   : > { %2755 = vst.msk [vmem:[%s359_s15 + $0x38] sm:$0xff] %vm396_vm0, %v2747_v26 }
0x1096   : > { %2753 = vst.msk [vmem:[%s359_s15 + $0x28] sm:$0xff] %vm396_vm0, %v2745_v12 }
0x1097 PF: > { %s20_s27 = sadd.s32 1, %s3751_s27  }
0x1098   : > { %p17_p5 = scmp.ge.s32.totalorder %s20_s27, 4  }
0x109a   :  { %19 = sbr.rel (!%p17_p5) target bundleno = 2 (0x2), region = 95 }
0x10a1   :  { %2778 = vsyncpa [#allocation3], 1 }
0x10a2   :  { %2780 = vsyncpa [#allocation3 + $0x1], 1 }
0x10a3   :  { %2781 = vsyncpa [#allocation5], 1 }

</bundles_post_ra>
